<compile_context>
chip_gen: v5e
topology: v5e:2x2
jax: 0.10.0
libtpu: 0.0.40
codegen_flags: <defaults>
</compile_context>

<pallas_src>
import functools
import math

import jax
import jax.numpy as jnp
from jax import lax
from jax.experimental import pallas as pl
from jax.experimental.pallas import tpu as pltpu


# --------------------- in-kernel building blocks (traced) --------------------- #
def _gcn_t(xT, adj, wT, bT, *, relu):
    """GCNConv in transposed (features, nodes) layout.

    out^T = W^T X^T M + b^T,  M = D^-1/2 (A+I) D^-1/2 (A symmetric => M symmetric),
    and X^T M = ((X^T * dinv) @ (A+I)) * dinv with dinv a (1, n) lane vector, so the
    n=128 stage stays lane-dense and needs no transposes / column vectors.
    """
    n = adj.shape[0]
    ri = lax.broadcasted_iota(jnp.int32, (n, n), 0)
    ci = lax.broadcasted_iota(jnp.int32, (n, n), 1)
    a_sl = adj + (ri == ci).astype(adj.dtype)                       # add self loops
    # symmetric graph => one cheap sublane-axis degree reduction serves both sides
    dinv = lax.rsqrt(jnp.sum(a_sl, axis=0, keepdims=True))          # (1, n)
    fout, fin = wT.shape
    if fin <= fout:
        # (A_norm @ X) @ W ordering: cheaper when fin < fout (conv1: 5 -> 20)
        prop = jnp.dot(xT * dinv, a_sl, preferred_element_type=jnp.float32) * dinv
        out = jnp.dot(wT, prop, preferred_element_type=jnp.float32) + bT
    else:
        h = jnp.dot(wT, xT, preferred_element_type=jnp.float32)     # (fout, n)
        out = jnp.dot(h * dinv, a_sl, preferred_element_type=jnp.float32) * dinv + bT
    if relu:
        out = jnp.maximum(out, 0.0)
    return out


def _topk_select_mats(score, k):
    """score: (1, n).  Build one-hot selection matrices sel (k, n) and selT (n, k)
    for the k highest scores, descending order, lowest index wins ties."""
    n = score.shape[1]
    lane = lax.broadcasted_iota(jnp.int32, (1, n), 1)
    idxs = []
    cur = score
    for _ in range(k):                                   # k is tiny & static: unrolled
        m = jnp.max(cur)
        idx = jnp.min(jnp.where(cur == m, lane, n))
        idxs.append(idx)
        cur = jnp.where(lane == idx, -jnp.inf, cur)
    r_kn = lax.broadcasted_iota(jnp.int32, (k, n), 0)
    c_kn = lax.broadcasted_iota(jnp.int32, (k, n), 1)
    tgt = jnp.zeros((k, n), jnp.int32)
    for r, idx in enumerate(idxs):
        tgt = jnp.where(r_kn == r, idx, tgt)
    sel = (c_kn == tgt).astype(jnp.float32)              # (k, n)
    r_nk = lax.broadcasted_iota(jnp.int32, (n, k), 0)
    c_nk = lax.broadcasted_iota(jnp.int32, (n, k), 1)
    tgtT = jnp.zeros((n, k), jnp.int32)
    for r, idx in enumerate(idxs):
        tgtT = jnp.where(c_nk == r, idx, tgtT)
    selT = (r_nk == tgtT).astype(jnp.float32)            # (n, k)
    return sel, selT


def _topk_pool_t(xT, adj, pT, k):
    """TopKPooling in transposed layout: tanh(score/||p||) gating, keep top-k nodes,
    filter the raw (symmetric) adjacency with the same permutation."""
    n = adj.shape[0]
    pnorm = jnp.maximum(jnp.sqrt(jnp.sum(pT * pT)), 1e-12)
    s = jnp.tanh(jnp.dot(pT, xT, preferred_element_type=jnp.float32) / pnorm)  # (1, n)
    xg = xT * s                                                       # gated features
    if k >= n and n == 1:                                             # keep the only node
        return adj, xg
    sel, selT = _topk_select_mats(s, k)
    x_new = jnp.dot(xg, selT, preferred_element_type=jnp.float32)     # (f, k)
    a_cols = jnp.dot(adj, selT, preferred_element_type=jnp.float32)   # (n, k)
    adj_new = jnp.dot(sel, a_cols, preferred_element_type=jnp.float32)  # (k, k)
    return adj_new, x_new


# ------------------------------ fused forward kernel -------------------------- #
def _net_kernel(adj_ref, xT_ref,
                w1_ref, b1_ref, p1_ref,
                w2_ref, b2_ref, p2_ref,
                w3_ref, b3_ref, p3_ref,
                w4_ref, b4_ref,
                wl_ref, bl_ref,
                outT_ref, *, k1, k2, k3):
    adj = adj_ref[...]                                               # (N, N) raw adjacency
    xT = xT_ref[...]                                                 # (F_in, N) lane-dense

    x1 = _gcn_t(xT, adj, w1_ref[...], b1_ref[...], relu=True)        # conv1 + relu
    adj1, x1p = _topk_pool_t(x1, adj, p1_ref[...], k1)               # pool  (ratio 0.01)
    x2 = _gcn_t(x1p, adj1, w2_ref[...], b2_ref[...], relu=False)     # conv2
    adj2, x2p = _topk_pool_t(x2, adj1, p2_ref[...], k2)              # pool2 (ratio 0.1)
    x3 = _gcn_t(x2p, adj2, w3_ref[...], b3_ref[...], relu=False)     # conv3
    adj3, x3p = _topk_pool_t(x3, adj2, p3_ref[...], k3)              # pool3 (ratio 0.1)
    x4 = _gcn_t(x3p, adj3, w4_ref[...], b4_ref[...], relu=False)     # conv4

    # head: relu(nn1(x)) + log_softmax(dim=1)  (per remaining node, as in the spec)
    h = jnp.dot(wl_ref[...], x4, preferred_element_type=jnp.float32) + bl_ref[...]
    h = jnp.maximum(h, 0.0)                                          # (8, k3)
    m = jnp.max(h, axis=0, keepdims=True)
    lse = jnp.log(jnp.sum(jnp.exp(h - m), axis=0, keepdims=True))
    outT_ref[...] = (h - m - lse).astype(outT_ref.dtype)             # log_softmax^T


def net_forward(params, x, adj):
    n = x.shape[0]
    k1 = max(1, int(math.ceil(0.01 * n)))        # 128 -> 2
    k2 = max(1, int(math.ceil(0.1 * k1)))        # 2 -> 1
    k3 = max(1, int(math.ceil(0.1 * k2)))        # 1 -> 1
    n_cls = params["blT"].shape[0]
    kernel = functools.partial(_net_kernel, k1=k1, k2=k2, k3=k3)
    vmem = pl.BlockSpec(memory_space=pltpu.MemorySpace.VMEM)
    outT = pl.pallas_call(
        kernel,
        out_shape=jax.ShapeDtypeStruct((n_cls, k3), jnp.float32),
        in_specs=[vmem] * 15,
        out_specs=vmem,
    )(adj, x.T,
      params["w1T"], params["b1T"], params["p1T"],
      params["w2T"], params["b2T"], params["p2T"],
      params["w3T"], params["b3T"], params["p3T"],
      params["w4T"], params["b4T"],
      params["wlT"], params["blT"])
    return outT.T                                                    # (k3, 8)


# ----------------------------------- params ----------------------------------- #
def init_params(key):
    dims = [(5, 20), (20, 15), (15, 12), (12, 10)]
    keys = jax.random.split(key, 16)
    p = {}
    for i, (fi, fo) in enumerate(dims, start=1):
        scale = 1.0 / math.sqrt(fi)
        p[f"w{i}T"] = scale * jax.random.normal(keys[2 * i], (fo, fi), jnp.float32)
        p[f"b{i}T"] = jnp.zeros((fo, 1), jnp.float32)
    pool_dims = [20, 15, 12]
    for i, d in enumerate(pool_dims, start=1):
        p[f"p{i}T"] = jax.random.normal(keys[9 + i], (1, d), jnp.float32)
    p["wlT"] = (1.0 / math.sqrt(10.0)) * jax.random.normal(keys[14], (8, 10), jnp.float32)
    p["blT"] = jnp.zeros((8, 1), jnp.float32)
    return p


if __name__ == "__main__":
    N, F_IN = 128, 5
    key = jax.random.PRNGKey(0)
    k_x, k_adj, k_params = jax.random.split(key, 3)

    x = jax.random.normal(k_x, (N, F_IN), dtype=jnp.float32)
    # random symmetric adjacency, no self-loops
    u = jax.random.uniform(k_adj, (N, N))
    adj = (u < 0.05).astype(jnp.float32)
    adj = jnp.maximum(adj, adj.T) * (1.0 - jnp.eye(N, dtype=jnp.float32))

    params = init_params(k_params)
    fwd = jax.jit(net_forward)
    out = jax.block_until_ready(fwd(params, x, adj))

    assert out.shape == (1, 8)
    row_sums = jnp.exp(out).sum(axis=1)              # log_softmax rows must sum to 1
    assert bool(jnp.all(jnp.isfinite(out)))
    assert bool(jnp.all(jnp.abs(row_sums - 1.0) < 1e-3))
    print("KERNEL_OK")
</pallas_src>

<mosaic_0001>
module attributes {stable_mosaic.version = 11 : i64} {
  func.func @_net_kernel(%arg0: memref<128x128xf32, #tpu.memory_space<vmem>>, %arg1: memref<5x128xf32, #tpu.memory_space<vmem>>, %arg2: memref<20x5xf32, #tpu.memory_space<vmem>>, %arg3: memref<20x1xf32, #tpu.memory_space<vmem>>, %arg4: memref<1x20xf32, #tpu.memory_space<vmem>>, %arg5: memref<15x20xf32, #tpu.memory_space<vmem>>, %arg6: memref<15x1xf32, #tpu.memory_space<vmem>>, %arg7: memref<1x15xf32, #tpu.memory_space<vmem>>, %arg8: memref<12x15xf32, #tpu.memory_space<vmem>>, %arg9: memref<12x1xf32, #tpu.memory_space<vmem>>, %arg10: memref<1x12xf32, #tpu.memory_space<vmem>>, %arg11: memref<10x12xf32, #tpu.memory_space<vmem>>, %arg12: memref<10x1xf32, #tpu.memory_space<vmem>>, %arg13: memref<8x10xf32, #tpu.memory_space<vmem>>, %arg14: memref<8x1xf32, #tpu.memory_space<vmem>>, %arg15: memref<8x1xf32, #tpu.memory_space<vmem>>) attributes {dimension_semantics = [], scalar_prefetch = 0 : i64, scratch_operands = 0 : i64, tpu.core_type = #tpu.core_type<tc>} {
    %c0 = arith.constant 0 : index
    %c0_0 = arith.constant 0 : index
    %0 = vector.load %arg0[%c0, %c0_0] : memref<128x128xf32, #tpu.memory_space<vmem>>, vector<128x128xf32>
    %c0_1 = arith.constant 0 : index
    %c0_2 = arith.constant 0 : index
    %1 = vector.load %arg1[%c0_1, %c0_2] : memref<5x128xf32, #tpu.memory_space<vmem>>, vector<5x128xf32>
    %c0_3 = arith.constant 0 : index
    %c0_4 = arith.constant 0 : index
    %2 = vector.load %arg2[%c0_3, %c0_4] : memref<20x5xf32, #tpu.memory_space<vmem>>, vector<20x5xf32>
    %c0_5 = arith.constant 0 : index
    %c0_6 = arith.constant 0 : index
    %3 = vector.load %arg3[%c0_5, %c0_6] : memref<20x1xf32, #tpu.memory_space<vmem>>, vector<20x1xf32>
    %4 = tpu.iota {dimensions = array<i32: 0>} : vector<128x128xi32>
    %5 = tpu.iota {dimensions = array<i32: 1>} : vector<128x128xi32>
    %6 = arith.cmpi eq, %4, %5 : vector<128x128xi32>
    %7 = arith.extui %6 : vector<128x128xi1> to vector<128x128xi32>
    %8 = arith.sitofp %7 : vector<128x128xi32> to vector<128x128xf32>
    %9 = arith.addf %0, %8 : vector<128x128xf32>
    %cst = arith.constant dense<0.000000e+00> : vector<128xf32>
    %10 = vector.multi_reduction <add>, %9, %cst [0] : vector<128x128xf32> to vector<128xf32>
    %11 = vector.shape_cast %10 : vector<128xf32> to vector<1x128xf32>
    %12 = math.rsqrt %11 : vector<1x128xf32>
    %13 = vector.broadcast %12 : vector<1x128xf32> to vector<5x128xf32>
    %14 = arith.mulf %1, %13 : vector<5x128xf32>
    %cst_7 = arith.constant dense<0.000000e+00> : vector<5x128xf32>
    %15 = tpu.matmul %14, %9, %cst_7 {dimension_numbers = #tpu.dot_dimension_numbers<[1], [0], [0], [1], [0, 0, 1, 1], [], []>} : vector<5x128xf32>, vector<128x128xf32>, vector<5x128xf32> -> vector<5x128xf32>
    %16 = vector.broadcast %12 : vector<1x128xf32> to vector<5x128xf32>
    %17 = arith.mulf %15, %16 : vector<5x128xf32>
    %cst_8 = arith.constant dense<0.000000e+00> : vector<20x128xf32>
    %18 = tpu.matmul %2, %17, %cst_8 {dimension_numbers = #tpu.dot_dimension_numbers<[1], [0], [0], [1], [0, 0, 1, 1], [], []>} : vector<20x5xf32>, vector<5x128xf32>, vector<20x128xf32> -> vector<20x128xf32>
    %19 = vector.broadcast %3 : vector<20x1xf32> to vector<20x128xf32>
    %20 = arith.addf %18, %19 : vector<20x128xf32>
    %cst_9 = arith.constant 0.000000e+00 : f32
    %21 = vector.broadcast %cst_9 : f32 to vector<20x128xf32>
    %22 = arith.maximumf %20, %21 : vector<20x128xf32>
    %c0_10 = arith.constant 0 : index
    %c0_11 = arith.constant 0 : index
    %23 = vector.load %arg4[%c0_10, %c0_11] : memref<1x20xf32, #tpu.memory_space<vmem>>, vector<1x20xf32>
    %24 = arith.mulf %23, %23 : vector<1x20xf32>
    %25 = vector.shape_cast %24 : vector<1x20xf32> to vector<1x1x20xf32>
    %cst_12 = arith.constant dense<0.000000e+00> : vector<1xf32>
    %26 = vector.multi_reduction <add>, %25, %cst_12 [1, 2] : vector<1x1x20xf32> to vector<1xf32>
    %27 = vector.shape_cast %26 : vector<1xf32> to vector<1x1x1xf32>
    %28 = vector.extract %27[0, 0, 0] : f32 from vector<1x1x1xf32>
    %29 = math.sqrt %28 : f32
    %cst_13 = arith.constant 9.99999996E-13 : f32
    %30 = arith.maximumf %29, %cst_13 : f32
    %cst_14 = arith.constant dense<0.000000e+00> : vector<1x128xf32>
    %31 = tpu.matmul %23, %22, %cst_14 {dimension_numbers = #tpu.dot_dimension_numbers<[1], [0], [0], [1], [0, 0, 1, 1], [], []>} : vector<1x20xf32>, vector<20x128xf32>, vector<1x128xf32> -> vector<1x128xf32>
    %32 = vector.broadcast %30 : f32 to vector<1x128xf32>
    %33 = arith.divf %31, %32 : vector<1x128xf32>
    %34 = math.tanh %33 : vector<1x128xf32>
    %35 = vector.broadcast %34 : vector<1x128xf32> to vector<20x128xf32>
    %36 = arith.mulf %22, %35 : vector<20x128xf32>
    %37 = tpu.iota {dimensions = array<i32: 1>} : vector<1x128xi32>
    %38 = vector.shape_cast %34 : vector<1x128xf32> to vector<1x1x128xf32>
    %cst_15 = arith.constant dense<0xFF800000> : vector<1xf32>
    %39 = vector.multi_reduction <maximumf>, %38, %cst_15 [1, 2] : vector<1x1x128xf32> to vector<1xf32>
    %40 = vector.shape_cast %39 : vector<1xf32> to vector<1x1x1xf32>
    %41 = vector.extract %40[0, 0, 0] : f32 from vector<1x1x1xf32>
    %42 = vector.broadcast %41 : f32 to vector<1x128xf32>
    %43 = arith.cmpf oeq, %34, %42 : vector<1x128xf32>
    %c128_i32 = arith.constant 128 : i32
    %44 = vector.broadcast %c128_i32 : i32 to vector<1x128xi32>
    %45 = arith.select %43, %37, %44 : vector<1x128xi1>, vector<1x128xi32>
    %46 = vector.shape_cast %45 : vector<1x128xi32> to vector<1x1x128xi32>
    %cst_16 = arith.constant dense<2147483647> : vector<1xi32>
    %47 = vector.multi_reduction <minsi>, %46, %cst_16 [1, 2] : vector<1x1x128xi32> to vector<1xi32>
    %48 = vector.shape_cast %47 : vector<1xi32> to vector<1x1x1xi32>
    %49 = vector.extract %48[0, 0, 0] : i32 from vector<1x1x1xi32>
    %50 = vector.broadcast %49 : i32 to vector<1x128xi32>
    %51 = arith.cmpi eq, %37, %50 : vector<1x128xi32>
    %cst_17 = arith.constant 0xFF800000 : f32
    %52 = vector.broadcast %cst_17 : f32 to vector<1x128xf32>
    %53 = arith.select %51, %52, %34 : vector<1x128xi1>, vector<1x128xf32>
    %54 = vector.shape_cast %53 : vector<1x128xf32> to vector<1x1x128xf32>
    %cst_18 = arith.constant dense<0xFF800000> : vector<1xf32>
    %55 = vector.multi_reduction <maximumf>, %54, %cst_18 [1, 2] : vector<1x1x128xf32> to vector<1xf32>
    %56 = vector.shape_cast %55 : vector<1xf32> to vector<1x1x1xf32>
    %57 = vector.extract %56[0, 0, 0] : f32 from vector<1x1x1xf32>
    %58 = vector.broadcast %57 : f32 to vector<1x128xf32>
    %59 = arith.cmpf oeq, %53, %58 : vector<1x128xf32>
    %c128_i32_19 = arith.constant 128 : i32
    %60 = vector.broadcast %c128_i32_19 : i32 to vector<1x128xi32>
    %61 = arith.select %59, %37, %60 : vector<1x128xi1>, vector<1x128xi32>
    %62 = vector.shape_cast %61 : vector<1x128xi32> to vector<1x1x128xi32>
    %cst_20 = arith.constant dense<2147483647> : vector<1xi32>
    %63 = vector.multi_reduction <minsi>, %62, %cst_20 [1, 2] : vector<1x1x128xi32> to vector<1xi32>
    %64 = vector.shape_cast %63 : vector<1xi32> to vector<1x1x1xi32>
    %65 = vector.extract %64[0, 0, 0] : i32 from vector<1x1x1xi32>
    %66 = tpu.iota {dimensions = array<i32: 0>} : vector<2x128xi32>
    %67 = tpu.iota {dimensions = array<i32: 1>} : vector<2x128xi32>
    %c0_i32 = arith.constant 0 : i32
    %68 = vector.broadcast %c0_i32 : i32 to vector<2x128xi32>
    %c0_i32_21 = arith.constant 0 : i32
    %69 = vector.broadcast %c0_i32_21 : i32 to vector<2x128xi32>
    %70 = arith.cmpi eq, %66, %69 : vector<2x128xi32>
    %71 = vector.broadcast %49 : i32 to vector<2x128xi32>
    %72 = arith.select %70, %71, %68 : vector<2x128xi1>, vector<2x128xi32>
    %c1_i32 = arith.constant 1 : i32
    %73 = vector.broadcast %c1_i32 : i32 to vector<2x128xi32>
    %74 = arith.cmpi eq, %66, %73 : vector<2x128xi32>
    %75 = vector.broadcast %65 : i32 to vector<2x128xi32>
    %76 = arith.select %74, %75, %72 : vector<2x128xi1>, vector<2x128xi32>
    %77 = arith.cmpi eq, %67, %76 : vector<2x128xi32>
    %78 = arith.extui %77 : vector<2x128xi1> to vector<2x128xi32>
    %79 = arith.sitofp %78 : vector<2x128xi32> to vector<2x128xf32>
    %80 = tpu.iota {dimensions = array<i32: 0>} : vector<128x2xi32>
    %81 = tpu.iota {dimensions = array<i32: 1>} : vector<128x2xi32>
    %c0_i32_22 = arith.constant 0 : i32
    %82 = vector.broadcast %c0_i32_22 : i32 to vector<128x2xi32>
    %c0_i32_23 = arith.constant 0 : i32
    %83 = vector.broadcast %c0_i32_23 : i32 to vector<128x2xi32>
    %84 = arith.cmpi eq, %81, %83 : vector<128x2xi32>
    %85 = vector.broadcast %49 : i32 to vector<128x2xi32>
    %86 = arith.select %84, %85, %82 : vector<128x2xi1>, vector<128x2xi32>
    %c1_i32_24 = arith.constant 1 : i32
    %87 = vector.broadcast %c1_i32_24 : i32 to vector<128x2xi32>
    %88 = arith.cmpi eq, %81, %87 : vector<128x2xi32>
    %89 = vector.broadcast %65 : i32 to vector<128x2xi32>
    %90 = arith.select %88, %89, %86 : vector<128x2xi1>, vector<128x2xi32>
    %91 = arith.cmpi eq, %80, %90 : vector<128x2xi32>
    %92 = arith.extui %91 : vector<128x2xi1> to vector<128x2xi32>
    %93 = arith.sitofp %92 : vector<128x2xi32> to vector<128x2xf32>
    %cst_25 = arith.constant dense<0.000000e+00> : vector<20x2xf32>
    %94 = tpu.matmul %36, %93, %cst_25 {dimension_numbers = #tpu.dot_dimension_numbers<[1], [0], [0], [1], [0, 0, 1, 1], [], []>} : vector<20x128xf32>, vector<128x2xf32>, vector<20x2xf32> -> vector<20x2xf32>
    %cst_26 = arith.constant dense<0.000000e+00> : vector<128x2xf32>
    %95 = tpu.matmul %0, %93, %cst_26 {dimension_numbers = #tpu.dot_dimension_numbers<[1], [0], [0], [1], [0, 0, 1, 1], [], []>} : vector<128x128xf32>, vector<128x2xf32>, vector<128x2xf32> -> vector<128x2xf32>
    %cst_27 = arith.constant dense<0.000000e+00> : vector<2x2xf32>
    %96 = tpu.matmul %79, %95, %cst_27 {dimension_numbers = #tpu.dot_dimension_numbers<[1], [0], [0], [1], [0, 0, 1, 1], [], []>} : vector<2x128xf32>, vector<128x2xf32>, vector<2x2xf32> -> vector<2x2xf32>
    %c0_28 = arith.constant 0 : index
    %c0_29 = arith.constant 0 : index
    %97 = vector.load %arg5[%c0_28, %c0_29] : memref<15x20xf32, #tpu.memory_space<vmem>>, vector<15x20xf32>
    %c0_30 = arith.constant 0 : index
    %c0_31 = arith.constant 0 : index
    %98 = vector.load %arg6[%c0_30, %c0_31] : memref<15x1xf32, #tpu.memory_space<vmem>>, vector<15x1xf32>
    %99 = tpu.iota {dimensions = array<i32: 0>} : vector<2x2xi32>
    %100 = tpu.iota {dimensions = array<i32: 1>} : vector<2x2xi32>
    %101 = arith.cmpi eq, %99, %100 : vector<2x2xi32>
    %102 = arith.extui %101 : vector<2x2xi1> to vector<2x2xi32>
    %103 = arith.sitofp %102 : vector<2x2xi32> to vector<2x2xf32>
    %104 = arith.addf %96, %103 : vector<2x2xf32>
    %cst_32 = arith.constant dense<0.000000e+00> : vector<2xf32>
    %105 = vector.multi_reduction <add>, %104, %cst_32 [0] : vector<2x2xf32> to vector<2xf32>
    %106 = vector.shape_cast %105 : vector<2xf32> to vector<1x2xf32>
    %107 = math.rsqrt %106 : vector<1x2xf32>
    %cst_33 = arith.constant dense<0.000000e+00> : vector<15x2xf32>
    %108 = tpu.matmul %97, %94, %cst_33 {dimension_numbers = #tpu.dot_dimension_numbers<[1], [0], [0], [1], [0, 0, 1, 1], [], []>} : vector<15x20xf32>, vector<20x2xf32>, vector<15x2xf32> -> vector<15x2xf32>
    %109 = vector.broadcast %107 : vector<1x2xf32> to vector<15x2xf32>
    %110 = arith.mulf %108, %109 : vector<15x2xf32>
    %cst_34 = arith.constant dense<0.000000e+00> : vector<15x2xf32>
    %111 = tpu.matmul %110, %104, %cst_34 {dimension_numbers = #tpu.dot_dimension_numbers<[1], [0], [0], [1], [0, 0, 1, 1], [], []>} : vector<15x2xf32>, vector<2x2xf32>, vector<15x2xf32> -> vector<15x2xf32>
    %112 = vector.broadcast %107 : vector<1x2xf32> to vector<15x2xf32>
    %113 = arith.mulf %111, %112 : vector<15x2xf32>
    %114 = vector.broadcast %98 : vector<15x1xf32> to vector<15x2xf32>
    %115 = arith.addf %113, %114 : vector<15x2xf32>
    %c0_35 = arith.constant 0 : index
    %c0_36 = arith.constant 0 : index
    %116 = vector.load %arg7[%c0_35, %c0_36] : memref<1x15xf32, #tpu.memory_space<vmem>>, vector<1x15xf32>
    %117 = arith.mulf %116, %116 : vector<1x15xf32>
    %118 = vector.shape_cast %117 : vector<1x15xf32> to vector<1x1x15xf32>
    %cst_37 = arith.constant dense<0.000000e+00> : vector<1xf32>
    %119 = vector.multi_reduction <add>, %118, %cst_37 [1, 2] : vector<1x1x15xf32> to vector<1xf32>
    %120 = vector.shape_cast %119 : vector<1xf32> to vector<1x1x1xf32>
    %121 = vector.extract %120[0, 0, 0] : f32 from vector<1x1x1xf32>
    %122 = math.sqrt %121 : f32
    %cst_38 = arith.constant 9.99999996E-13 : f32
    %123 = arith.maximumf %122, %cst_38 : f32
    %cst_39 = arith.constant dense<0.000000e+00> : vector<1x2xf32>
    %124 = tpu.matmul %116, %115, %cst_39 {dimension_numbers = #tpu.dot_dimension_numbers<[1], [0], [0], [1], [0, 0, 1, 1], [], []>} : vector<1x15xf32>, vector<15x2xf32>, vector<1x2xf32> -> vector<1x2xf32>
    %125 = vector.broadcast %123 : f32 to vector<1x2xf32>
    %126 = arith.divf %124, %125 : vector<1x2xf32>
    %127 = math.tanh %126 : vector<1x2xf32>
    %128 = vector.broadcast %127 : vector<1x2xf32> to vector<15x2xf32>
    %129 = arith.mulf %115, %128 : vector<15x2xf32>
    %130 = tpu.iota {dimensions = array<i32: 1>} : vector<1x2xi32>
    %131 = vector.shape_cast %127 : vector<1x2xf32> to vector<1x1x2xf32>
    %cst_40 = arith.constant dense<0xFF800000> : vector<1xf32>
    %132 = vector.multi_reduction <maximumf>, %131, %cst_40 [1, 2] : vector<1x1x2xf32> to vector<1xf32>
    %133 = vector.shape_cast %132 : vector<1xf32> to vector<1x1x1xf32>
    %134 = vector.extract %133[0, 0, 0] : f32 from vector<1x1x1xf32>
    %135 = vector.broadcast %134 : f32 to vector<1x2xf32>
    %136 = arith.cmpf oeq, %127, %135 : vector<1x2xf32>
    %c2_i32 = arith.constant 2 : i32
    %137 = vector.broadcast %c2_i32 : i32 to vector<1x2xi32>
    %138 = arith.select %136, %130, %137 : vector<1x2xi1>, vector<1x2xi32>
    %139 = vector.shape_cast %138 : vector<1x2xi32> to vector<1x1x2xi32>
    %cst_41 = arith.constant dense<2147483647> : vector<1xi32>
    %140 = vector.multi_reduction <minsi>, %139, %cst_41 [1, 2] : vector<1x1x2xi32> to vector<1xi32>
    %141 = vector.shape_cast %140 : vector<1xi32> to vector<1x1x1xi32>
    %142 = vector.extract %141[0, 0, 0] : i32 from vector<1x1x1xi32>
    %143 = tpu.iota {dimensions = array<i32: 0>} : vector<1x2xi32>
    %144 = tpu.iota {dimensions = array<i32: 1>} : vector<1x2xi32>
    %c0_i32_42 = arith.constant 0 : i32
    %145 = vector.broadcast %c0_i32_42 : i32 to vector<1x2xi32>
    %c0_i32_43 = arith.constant 0 : i32
    %146 = vector.broadcast %c0_i32_43 : i32 to vector<1x2xi32>
    %147 = arith.cmpi eq, %143, %146 : vector<1x2xi32>
    %148 = vector.broadcast %142 : i32 to vector<1x2xi32>
    %149 = arith.select %147, %148, %145 : vector<1x2xi1>, vector<1x2xi32>
    %150 = arith.cmpi eq, %144, %149 : vector<1x2xi32>
    %151 = arith.extui %150 : vector<1x2xi1> to vector<1x2xi32>
    %152 = arith.sitofp %151 : vector<1x2xi32> to vector<1x2xf32>
    %153 = tpu.iota {dimensions = array<i32: 0>} : vector<2x1xi32>
    %154 = tpu.iota {dimensions = array<i32: 1>} : vector<2x1xi32>
    %c0_i32_44 = arith.constant 0 : i32
    %155 = vector.broadcast %c0_i32_44 : i32 to vector<2x1xi32>
    %c0_i32_45 = arith.constant 0 : i32
    %156 = vector.broadcast %c0_i32_45 : i32 to vector<2x1xi32>
    %157 = arith.cmpi eq, %154, %156 : vector<2x1xi32>
    %158 = vector.broadcast %142 : i32 to vector<2x1xi32>
    %159 = arith.select %157, %158, %155 : vector<2x1xi1>, vector<2x1xi32>
    %160 = arith.cmpi eq, %153, %159 : vector<2x1xi32>
    %161 = arith.extui %160 : vector<2x1xi1> to vector<2x1xi32>
    %162 = arith.sitofp %161 : vector<2x1xi32> to vector<2x1xf32>
    %cst_46 = arith.constant dense<0.000000e+00> : vector<15x1xf32>
    %163 = tpu.matmul %129, %162, %cst_46 {dimension_numbers = #tpu.dot_dimension_numbers<[1], [0], [0], [1], [0, 0, 1, 1], [], []>} : vector<15x2xf32>, vector<2x1xf32>, vector<15x1xf32> -> vector<15x1xf32>
    %cst_47 = arith.constant dense<0.000000e+00> : vector<2x1xf32>
    %164 = tpu.matmul %96, %162, %cst_47 {dimension_numbers = #tpu.dot_dimension_numbers<[1], [0], [0], [1], [0, 0, 1, 1], [], []>} : vector<2x2xf32>, vector<2x1xf32>, vector<2x1xf32> -> vector<2x1xf32>
    %cst_48 = arith.constant dense<0.000000e+00> : vector<1x1xf32>
    %165 = tpu.matmul %152, %164, %cst_48 {dimension_numbers = #tpu.dot_dimension_numbers<[1], [0], [0], [1], [0, 0, 1, 1], [], []>} : vector<1x2xf32>, vector<2x1xf32>, vector<1x1xf32> -> vector<1x1xf32>
    %c0_49 = arith.constant 0 : index
    %c0_50 = arith.constant 0 : index
    %166 = vector.load %arg8[%c0_49, %c0_50] : memref<12x15xf32, #tpu.memory_space<vmem>>, vector<12x15xf32>
    %c0_51 = arith.constant 0 : index
    %c0_52 = arith.constant 0 : index
    %167 = vector.load %arg9[%c0_51, %c0_52] : memref<12x1xf32, #tpu.memory_space<vmem>>, vector<12x1xf32>
    %168 = tpu.iota {dimensions = array<i32: 0>} : vector<1x1xi32>
    %169 = tpu.iota {dimensions = array<i32: 1>} : vector<1x1xi32>
    %170 = arith.cmpi eq, %168, %169 : vector<1x1xi32>
    %171 = arith.extui %170 : vector<1x1xi1> to vector<1x1xi32>
    %172 = arith.sitofp %171 : vector<1x1xi32> to vector<1x1xf32>
    %173 = arith.addf %165, %172 : vector<1x1xf32>
    %cst_53 = arith.constant dense<0.000000e+00> : vector<1xf32>
    %174 = vector.multi_reduction <add>, %173, %cst_53 [0] : vector<1x1xf32> to vector<1xf32>
    %175 = vector.shape_cast %174 : vector<1xf32> to vector<1x1xf32>
    %176 = math.rsqrt %175 : vector<1x1xf32>
    %cst_54 = arith.constant dense<0.000000e+00> : vector<12x1xf32>
    %177 = tpu.matmul %166, %163, %cst_54 {dimension_numbers = #tpu.dot_dimension_numbers<[1], [0], [0], [1], [0, 0, 1, 1], [], []>} : vector<12x15xf32>, vector<15x1xf32>, vector<12x1xf32> -> vector<12x1xf32>
    %178 = vector.broadcast %176 : vector<1x1xf32> to vector<12x1xf32>
    %179 = arith.mulf %177, %178 : vector<12x1xf32>
    %cst_55 = arith.constant dense<0.000000e+00> : vector<12x1xf32>
    %180 = tpu.matmul %179, %173, %cst_55 {dimension_numbers = #tpu.dot_dimension_numbers<[1], [0], [0], [1], [0, 0, 1, 1], [], []>} : vector<12x1xf32>, vector<1x1xf32>, vector<12x1xf32> -> vector<12x1xf32>
    %181 = vector.broadcast %176 : vector<1x1xf32> to vector<12x1xf32>
    %182 = arith.mulf %180, %181 : vector<12x1xf32>
    %183 = arith.addf %182, %167 : vector<12x1xf32>
    %c0_56 = arith.constant 0 : index
    %c0_57 = arith.constant 0 : index
    %184 = vector.load %arg10[%c0_56, %c0_57] : memref<1x12xf32, #tpu.memory_space<vmem>>, vector<1x12xf32>
    %185 = arith.mulf %184, %184 : vector<1x12xf32>
    %186 = vector.shape_cast %185 : vector<1x12xf32> to vector<1x1x12xf32>
    %cst_58 = arith.constant dense<0.000000e+00> : vector<1xf32>
    %187 = vector.multi_reduction <add>, %186, %cst_58 [1, 2] : vector<1x1x12xf32> to vector<1xf32>
    %188 = vector.shape_cast %187 : vector<1xf32> to vector<1x1x1xf32>
    %189 = vector.extract %188[0, 0, 0] : f32 from vector<1x1x1xf32>
    %190 = math.sqrt %189 : f32
    %cst_59 = arith.constant 9.99999996E-13 : f32
    %191 = arith.maximumf %190, %cst_59 : f32
    %cst_60 = arith.constant dense<0.000000e+00> : vector<1x1xf32>
    %192 = tpu.matmul %184, %183, %cst_60 {dimension_numbers = #tpu.dot_dimension_numbers<[1], [0], [0], [1], [0, 0, 1, 1], [], []>} : vector<1x12xf32>, vector<12x1xf32>, vector<1x1xf32> -> vector<1x1xf32>
    %193 = vector.broadcast %191 : f32 to vector<1x1xf32>
    %194 = arith.divf %192, %193 : vector<1x1xf32>
    %195 = math.tanh %194 : vector<1x1xf32>
    %196 = vector.broadcast %195 : vector<1x1xf32> to vector<12x1xf32>
    %197 = arith.mulf %183, %196 : vector<12x1xf32>
    %c0_61 = arith.constant 0 : index
    %c0_62 = arith.constant 0 : index
    %198 = vector.load %arg11[%c0_61, %c0_62] : memref<10x12xf32, #tpu.memory_space<vmem>>, vector<10x12xf32>
    %c0_63 = arith.constant 0 : index
    %c0_64 = arith.constant 0 : index
    %199 = vector.load %arg12[%c0_63, %c0_64] : memref<10x1xf32, #tpu.memory_space<vmem>>, vector<10x1xf32>
    %200 = tpu.iota {dimensions = array<i32: 0>} : vector<1x1xi32>
    %201 = tpu.iota {dimensions = array<i32: 1>} : vector<1x1xi32>
    %202 = arith.cmpi eq, %200, %201 : vector<1x1xi32>
    %203 = arith.extui %202 : vector<1x1xi1> to vector<1x1xi32>
    %204 = arith.sitofp %203 : vector<1x1xi32> to vector<1x1xf32>
    %205 = arith.addf %165, %204 : vector<1x1xf32>
    %cst_65 = arith.constant dense<0.000000e+00> : vector<1xf32>
    %206 = vector.multi_reduction <add>, %205, %cst_65 [0] : vector<1x1xf32> to vector<1xf32>
    %207 = vector.shape_cast %206 : vector<1xf32> to vector<1x1xf32>
    %208 = math.rsqrt %207 : vector<1x1xf32>
    %cst_66 = arith.constant dense<0.000000e+00> : vector<10x1xf32>
    %209 = tpu.matmul %198, %197, %cst_66 {dimension_numbers = #tpu.dot_dimension_numbers<[1], [0], [0], [1], [0, 0, 1, 1], [], []>} : vector<10x12xf32>, vector<12x1xf32>, vector<10x1xf32> -> vector<10x1xf32>
    %210 = vector.broadcast %208 : vector<1x1xf32> to vector<10x1xf32>
    %211 = arith.mulf %209, %210 : vector<10x1xf32>
    %cst_67 = arith.constant dense<0.000000e+00> : vector<10x1xf32>
    %212 = tpu.matmul %211, %205, %cst_67 {dimension_numbers = #tpu.dot_dimension_numbers<[1], [0], [0], [1], [0, 0, 1, 1], [], []>} : vector<10x1xf32>, vector<1x1xf32>, vector<10x1xf32> -> vector<10x1xf32>
    %213 = vector.broadcast %208 : vector<1x1xf32> to vector<10x1xf32>
    %214 = arith.mulf %212, %213 : vector<10x1xf32>
    %215 = arith.addf %214, %199 : vector<10x1xf32>
    %c0_68 = arith.constant 0 : index
    %c0_69 = arith.constant 0 : index
    %216 = vector.load %arg13[%c0_68, %c0_69] : memref<8x10xf32, #tpu.memory_space<vmem>>, vector<8x10xf32>
    %cst_70 = arith.constant dense<0.000000e+00> : vector<8x1xf32>
    %217 = tpu.matmul %216, %215, %cst_70 {dimension_numbers = #tpu.dot_dimension_numbers<[1], [0], [0], [1], [0, 0, 1, 1], [], []>} : vector<8x10xf32>, vector<10x1xf32>, vector<8x1xf32> -> vector<8x1xf32>
    %c0_71 = arith.constant 0 : index
    %c0_72 = arith.constant 0 : index
    %218 = vector.load %arg14[%c0_71, %c0_72] : memref<8x1xf32, #tpu.memory_space<vmem>>, vector<8x1xf32>
    %219 = arith.addf %217, %218 : vector<8x1xf32>
    %cst_73 = arith.constant 0.000000e+00 : f32
    %220 = vector.broadcast %cst_73 : f32 to vector<8x1xf32>
    %221 = arith.maximumf %219, %220 : vector<8x1xf32>
    %cst_74 = arith.constant dense<0xFF800000> : vector<1xf32>
    %222 = vector.multi_reduction <maximumf>, %221, %cst_74 [0] : vector<8x1xf32> to vector<1xf32>
    %223 = vector.shape_cast %222 : vector<1xf32> to vector<1x1xf32>
    %224 = vector.broadcast %223 : vector<1x1xf32> to vector<8x1xf32>
    %225 = arith.subf %221, %224 : vector<8x1xf32>
    %226 = math.exp %225 : vector<8x1xf32>
    %cst_75 = arith.constant dense<0.000000e+00> : vector<1xf32>
    %227 = vector.multi_reduction <add>, %226, %cst_75 [0] : vector<8x1xf32> to vector<1xf32>
    %228 = vector.shape_cast %227 : vector<1xf32> to vector<1x1xf32>
    %229 = math.log %228 : vector<1x1xf32>
    %230 = vector.broadcast %223 : vector<1x1xf32> to vector<8x1xf32>
    %231 = arith.subf %221, %230 : vector<8x1xf32>
    %232 = vector.broadcast %229 : vector<1x1xf32> to vector<8x1xf32>
    %233 = arith.subf %231, %232 : vector<8x1xf32>
    %c0_76 = arith.constant 0 : index
    %c0_77 = arith.constant 0 : index
    %234 = vector.load %arg15[%c0_76, %c0_77] : memref<8x1xf32, #tpu.memory_space<vmem>>, vector<8x1xf32>
    tpu.vector_store %arg15[%c0_76, %c0_77], %233 {strides = array<i32>} : memref<8x1xf32, #tpu.memory_space<vmem>>, vector<8x1xf32>,
    return
  }
}

</mosaic_0001>

<bundles_post_ra>
// kernel: net_forward.1
= control target key start
LH: loop header
LB: loop body
LE: loop exit
PB: predicated region body
PF: predicated region fallthrough
CT: control target
= control target key end

     0   :  { %20 = vsyncpa [#allocation3], 0  ;;  %s1419_s21 = smov [#allocation2]   ;;  %s1420_s23 = smov 128   ;;  %s2138_s0 = inlined_call_operand.hbm [shape: f32[128,128], index: 0, kind: input, shape index: {}]   ;;  %s2139_s1 = inlined_call_operand.vmem [shape: f32[5,128], index: 1, kind: input, shape index: {}]   ;;  %s2140_s2 = inlined_call_operand.vmem [shape: f32[20,5], index: 2, kind: input, shape index: {}]   ;;  %s2141_s3 = inlined_call_operand.vmem [shape: f32[20,1], index: 3, kind: input, shape index: {}]   ;;  %s2142_s4 = inlined_call_operand.vmem [shape: f32[1,20], index: 4, kind: input, shape index: {}]   ;;  %s2143_s5 = inlined_call_operand.vmem [shape: f32[15,20], index: 5, kind: input, shape index: {}]   ;;  %s2144_s6 = inlined_call_operand.vmem [shape: f32[15,1], index: 6, kind: input, shape index: {}]   ;;  %s2145_s7 = inlined_call_operand.vmem [shape: f32[1,15], index: 7, kind: input, shape index: {}]   ;;  %s2146_s8 = inlined_call_operand.vmem [shape: f32[12,15], index: 8, kind: input, shape index: {}]   ;;  %s2147_s9 = inlined_call_operand.vmem [shape: f32[12,1], index: 9, kind: input, shape index: {}]   ;;  %s2148_s10 = inlined_call_operand.vmem [shape: f32[1,12], index: 10, kind: input, shape index: {}]   ;;  %s2149_s11 = inlined_call_operand.vmem [shape: f32[10,12], index: 11, kind: input, shape index: {}]   ;;  %s2150_s12 = inlined_call_operand.vmem [shape: f32[10,1], index: 12, kind: input, shape index: {}]   ;;  %s2151_s13 = inlined_call_operand.vmem [shape: f32[8,10], index: 13, kind: input, shape index: {}]   ;;  %s2152_s14 = inlined_call_operand.vmem [shape: f32[8,1], index: 14, kind: input, shape index: {}]   ;;  %s2153_s15 = inlined_call_operand.vmem [shape: f32[8,1], index: 15, kind: output, shape index: {}]  }
   0x1   :  { %s25_s20 = sshll.u32 %s2138_s0, 4  ;;  %s27_s22 = sshll.u32 %s1419_s21, 4  ;;  %s26_s20 = int_to_ptr.hbm [resolvable:$true] %s25_s20  ;;  %s28_s22 = int_to_ptr.vmem [resolvable:$true] %s27_s22 }
   0x2   :  { %s1421_s24 = smov 8  }
   0x3   :  { %33 = dma.hbm_to_vmem [thread:$0]  %s26_s20, 2048, %s28_s22, [#allocation3], %s1420_s23, %s1420_s23, %s1421_s24  }
   0x4   :  { %1417 = dma.done.wait [#allocation3], 2048  }
   0x5   :  { %1418 = vsyncadd [#allocation3], 4294965248  ;;  %v89_v0 = vlaneseq  ;;  %v1537_v9 = vld [vmem:[#allocation2 + $0x78] sm:$0xff]  ;;  %v1422_v10 = vmov 0.0   ;;  %v1540_v12 = vld [vmem:[#allocation2 + $0x70] sm:$0xff] }
   0x6   :  { %v1552_v17 = vld [vmem:[#allocation2 + $0x68] sm:$0xff]  ;;  %v1568_v21 = vld [vmem:[#allocation2 + $0x60] sm:$0xff]  ;;  %v1573_v24 = vld [vmem:[#allocation2 + $0x58] sm:$0xff]  ;;  %s1424_s0 = smov 1e-12  }
   0x7   :  { %v1509_v1 = vshrl.u32 %v89_v0, 7  ;;  %v1511_v2 = vand.u32 127, %v89_v0  ;;  %v1575_v25 = vld [vmem:[#allocation2 + $0x50] sm:$0xff]  ;;  %v1618_v39 = vld [vmem:[#allocation2] sm:$0xff]  ;;  %v1620_v40 = vld [vmem:[#allocation2 + $0x8] sm:$0xff] }
   0x8   :  { %v1622_v41 = vld [vmem:[#allocation2 + $0x10] sm:$0xff]  ;;  %v1624_v42 = vld [vmem:[#allocation2 + $0x48] sm:$0xff]  ;;  %v1635_v43 = vld [vmem:[#allocation2 + $0x18] sm:$0xff] }
   0x9   :  { %v1514_v3 = vadd.s32 120, %v1509_v1  ;;  %v1517_v4 = vadd.s32 112, %v1509_v1  ;;  %v1520_v5 = vadd.s32 104, %v1509_v1  ;;  %v1523_v6 = vadd.s32 96, %v1509_v1  ;;  %v1643_v48 = vld [vmem:[#allocation2 + $0x40] sm:$0xff]  ;;  %v1660_v55 = vld [vmem:[#allocation2 + $0x38] sm:$0xff] }
   0xa   :  { %v1526_v7 = vadd.s32 88, %v1509_v1  ;;  %v1529_v8 = vadd.s32 80, %v1509_v1  ;;  %v1544_v14 = vadd.s32 72, %v1509_v1  ;;  %v1547_v15 = vadd.s32 64, %v1509_v1  ;;  %v1654_v53 = vld [vmem:[#allocation2 + $0x20] sm:$0xff]  ;;  %v1668_v60 = vld [vmem:[#allocation2 + $0x28] sm:$0xff] }
   0xb   :  { %vm123_vm0 = vcmp.eq.s32.totalorder %v1514_v3, %v1511_v2  ;;  %vm122_vm1 = vcmp.eq.s32.totalorder %v1517_v4, %v1511_v2  ;;  %vm121_vm2 = vcmp.eq.s32.totalorder %v1520_v5, %v1511_v2  ;;  %vm120_vm3 = vcmp.eq.s32.totalorder %v1523_v6, %v1511_v2  ;;  %v1674_v62 = vld [vmem:[#allocation2 + $0x30] sm:$0xff] }
   0xc   :  { %v1225_v11 = vsel %vm123_vm0, 1.0, %v1422_v10  ;;  %v1224_v13 = vsel %vm122_vm1, 1.0, %v1422_v10  ;;  %v1223_v18 = vsel %vm121_vm2, 1.0, %v1422_v10  ;;  %vm119_vm4 = vcmp.eq.s32.totalorder %v1526_v7, %v1511_v2 }
   0xd   :  { %v1550_v16 = vadd.f32 %v1225_v11, %v1537_v9  ;;  %vm118_vm5 = vcmp.eq.s32.totalorder %v1529_v8, %v1511_v2  ;;  %v1563_v19 = vadd.f32 %v1224_v13, %v1540_v12  ;;  %v1566_v20 = vadd.f32 %v1223_v18, %v1552_v17 }
   0xe   :  { %v1222_v22 = vsel %vm120_vm3, 1.0, %v1422_v10  ;;  %v1221_v23 = vsel %vm119_vm4, 1.0, %v1422_v10  ;;  %v1220_v26 = vsel %vm118_vm5, 1.0, %v1422_v10  ;;  %vm117_vm6 = vcmp.eq.s32.totalorder %v1544_v14, %v1511_v2 }
   0xf   :  { %204 = vmatpush.msra.mxu0 %v1550_v16  ;;  %vm116_vm7 = vcmp.eq.s32.totalorder %v1547_v15, %v1511_v2  ;;  %v1583_v27 = vadd.s32 56, %v1509_v1  ;;  %v1586_v28 = vadd.s32 32, %v1509_v1  ;;  %v1589_v29 = vadd.s32 24, %v1509_v1 }
  0x10   :  { %v1592_v30 = vadd.s32 8, %v1509_v1  ;;  %v1595_v31 = vadd.s32 16, %v1509_v1  ;;  %v1599_v32 = vadd.f32 %v1222_v22, %v1568_v21  ;;  %v1602_v33 = vadd.f32 %v1221_v23, %v1573_v24 }
  0x11   :  { %205 = vmatpush.msra.mxu0 %v1563_v19  ;;  %v166_v34 = vadd.f32 %v1220_v26, %v1575_v25  ;;  %v1219_v35 = vsel %vm117_vm6, 1.0, %v1422_v10  ;;  %v1607_v36 = vadd.s32 40, %v1509_v1  ;;  %v1218_v37 = vsel %vm116_vm7, 1.0, %v1422_v10 }
  0x12   :  { %vm115_vm8 = vcmp.eq.s32.totalorder %v1583_v27, %v1511_v2  ;;  %v1614_v38 = vadd.s32 48, %v1509_v1  ;;  %vm111_vm9 = vcmp.eq.s32.totalorder %v1589_v29, %v1511_v2  ;;  %vm112_vm10 = vcmp.eq.s32.totalorder %v1586_v28, %v1511_v2 }
  0x13   :  { %206 = vmatpush.msra.mxu0 %v1566_v20  ;;  %vm108_vm11 = vcmp.eq.s32.totalorder %v1509_v1, %v1511_v2  ;;  %vm109_vm12 = vcmp.eq.s32.totalorder %v1592_v30, %v1511_v2  ;;  %vm110_vm13 = vcmp.eq.s32.totalorder %v1595_v31, %v1511_v2  ;;  %v1213_v44 = vsel %vm111_vm9, 1.0, %v1422_v10 }
  0x14   :  { %v1639_v45 = vsel %vm108_vm11, 1.0, %v1422_v10  ;;  %v1211_v46 = vsel %vm109_vm12, 1.0, %v1422_v10  ;;  %v1212_v47 = vsel %vm110_vm13, 1.0, %v1422_v10  ;;  %vm113_vm14 = vcmp.eq.s32.totalorder %v1607_v36, %v1511_v2 }
  0x15   :  { %207 = vmatpush.msra.mxu0 %v1599_v32  ;;  %v156_v49 = vadd.f32 %v1639_v45, %v1618_v39  ;;  %v157_v50 = vadd.f32 %v1211_v46, %v1620_v40  ;;  %v158_v51 = vadd.f32 %v1212_v47, %v1622_v41  ;;  %v165_v52 = vadd.f32 %v1219_v35, %v1624_v42 }
  0x16   :  { %vm114_vm15 = vcmp.eq.s32.totalorder %v1614_v38, %v1511_v2  ;;  %v1214_v54 = vsel %vm112_vm10, 1.0, %v1422_v10  ;;  %v1217_v56 = vsel %vm115_vm8, 1.0, %v1422_v10  ;;  %v159_v57 = vadd.f32 %v1213_v44, %v1635_v43 }
  0x17   :  { %208 = vmatpush.msra.mxu0 %v1602_v33  ;;  %v172_v58 = vadd.f32 %v157_v50, %v156_v49  ;;  %v164_v59 = vadd.f32 %v1218_v37, %v1643_v48  ;;  %v1215_v61 = vsel %vm113_vm14, 1.0, %v1422_v10  ;;  %v1216_v63 = vsel %vm114_vm15, 1.0, %v1422_v10 }
  0x18   :  { %v160_v0 = vadd.f32 %v1214_v54, %v1654_v53  ;;  %v163_v13 = vadd.f32 %v1217_v56, %v1660_v55  ;;  %v161_v18 = vadd.f32 %v1215_v61, %v1668_v60  ;;  %v162_v23 = vadd.f32 %v1216_v63, %v1674_v62 }
  0x19   :  { %209 = vmatpush.msra.mxu0 %v166_v34  ;;  %v173_v11 = vadd.f32 %v172_v58, %v158_v51  ;;  %vm285_vm0 = vcmask 155648   ;;  %vm250_vm4 = vcmask 1044480   ;;  %vm240_vm5 = vcmask 39936  }
  0x1a   :  { %vm2158_vm8 = vcmask 1043456   ;;  %vm2157_vm9 = vcmask 162816   ;;  %vm2154_vm14 = vcmask 1040384  }
  0x1b   :  { %210 = vmatpush.msra.mxu0 %v165_v52  ;;  %v174_v22 = vadd.f32 %v173_v11, %v159_v57 }
  0x1d   :  { %211 = vmatpush.msra.mxu0 %v164_v59  ;;  %v175_v26 = vadd.f32 %v174_v22, %v160_v0 }
  0x1f   :  { %212 = vmatpush.msra.mxu0 %v163_v13  ;;  %v176_v35 = vadd.f32 %v175_v26, %v161_v18 }
  0x21   :  { %213 = vmatpush.msra.mxu0 %v162_v23  ;;  %v177_v37 = vadd.f32 %v176_v35, %v162_v23  ;;  %v87_v35 = vld [vmem:[%s2141_s3 + $0x8] sm:$0xff] }
  0x23   :  { %214 = vmatpush.msra.mxu0 %v161_v18  ;;  %v178_v44 = vadd.f32 %v177_v37, %v163_v13  ;;  %v82_v13 = vld [vmem:[%s2139_s1] sm:$0x1f]  ;;  %v1423_v37 = vmov 0  }
  0x24   :  { %1363 = vset.pattern.permute.xlu1 %v1423_v37  ;;  %1362 = vset.pattern.permute.xlu0 %v1423_v37 }
  0x25   :  { %215 = vmatpush.msra.mxu0 %v160_v0  ;;  %v179_v46 = vadd.f32 %v178_v44, %v164_v59  ;;  %232 = vperm.xlu1 %1363, %v87_v35   ;;  %v86_v44 = vld [vmem:[%s2141_s3] sm:$0xff] }
  0x26   :  { %1364 = vset.pattern.permute.xlu2 %v1423_v37 }
  0x27   :  { %216 = vmatpush.msra.mxu0 %v159_v57  ;;  %v180_v47 = vadd.f32 %v179_v46, %v165_v52  ;;  %v1689_v57 = vld [vmem:[%s2142_s4] sm:$0x1]  ;;  %v88_v46 = vld [vmem:[%s2141_s3 + $0x10] sm:$0xf] }
  0x29   :  { %217 = vmatpush.msra.mxu0 %v158_v51  ;;  %v181_v54 = vadd.f32 %v180_v47, %v166_v34  ;;  %v284_v34 = vmul.f32 %v1689_v57, %v1689_v57 }
  0x2b   :  { %218 = vmatpush.msra.mxu0 %v157_v50  ;;  %v182_v56 = vadd.f32 %v181_v54, %v1602_v33  ;;  %v286_v33 = vsel %vm285_vm0, %v284_v34, 0.0 }
  0x2c   :  { %287 = vadd.xlane.f32.xlu0 %v286_v33  ;;  %v83_v33 = vld [vmem:[%s2140_s2] sm:$0xff] }
  0x2d   :  { %219 = vmatpush.msra.mxu0 %v156_v49  ;;  %v183_v58 = vadd.f32 %v182_v56, %v1599_v32  ;;  %227 = vperm.xlu1 %1363, %v86_v44  }
  0x2f   :  { %v184_v61 = vadd.f32 %v183_v58, %v1566_v20 }
  0x31   :  { %v185_v63 = vadd.f32 %v184_v61, %v1563_v19  ;;  %v614_v61 = vld [vmem:[%s2144_s6 + $0x8] sm:$0x7f] }
  0x33   :  { %v186_v11 = vadd.f32 %v185_v63, %v1550_v16 }
  0x35   :  { %v187_v18 = vrot.slane %v186_v11, 4 }
  0x37   :  { %v188_v49 = vadd.f32 %v187_v18, %v186_v11 }
  0x39   :  { %v189_v50 = vrot.slane %v188_v49, 2 }
  0x3b   :  { %v190_v32 = vadd.f32 %v189_v50, %v188_v49  ;;  %v84_v50 = vld [vmem:[%s2140_s2 + $0x8] sm:$0xff] }
  0x3d   :  { %v191_v20 = vrot.slane %v190_v32, 1 }
  0x3f   :  { %v192_v51 = vadd.f32 %v191_v20, %v190_v32  ;;  %v85_v32 = vld [vmem:[%s2140_s2 + $0x10] sm:$0xf] }
  0x40   :  { %237 = vperm.xlu0 %1362, %v88_v46  }
  0x41   :  { %1365 = vrsqrt.f32 %v192_v51  ;;  %vm199_vm1 = vweird.f32 %v192_v51 }
  0x47   :  { %v1366_v19 = vpop.eup %1365 }
  0x48   :  { %v194_v16 = vmul.f32 %v1366_v19, %v192_v51  ;;  %vm200_vm2 = vweird.f32 %v1366_v19  ;;  %711 = vperm.xlu0 %1362, %v614_v61  }
  0x49   :  { %vm201_vm3 = vmor %vm199_vm1, %vm200_vm2 }
  0x4a   :  { %v195_v52 = vmul.f32 %v1366_v19, %v194_v16 }
  0x4c   :  { %v196_v59 = vmul.f32 0.5, %v195_v52 }
  0x4e   :  { %v197_v0 = vsub.f32 1.5, %v196_v59 }
  0x50   :  { %v198_v22 = vmul.f32 %v1366_v19, %v197_v0 }
  0x52   :  { %v202_v23 = vsel %vm201_vm3, %v1366_v19, %v198_v22 }
  0x53   :  { %v203_v26 = vmul.f32 %v202_v23, %v82_v13 }
  0x55   :  { %220 = vmatmul.f32.vlgmr.msra.gmra.mxu0 %v203_v26 }
  0x9f   :  { %v288_v47 = vpop.xlane.xlu0 %287 }
  0xa0   :  { %v289_v54 = vrot.slane %v288_v47, 4 }
  0xa2   :  { %v290_v56 = vadd.f32 %v289_v54, %v288_v47 }
  0xa4   :  { %v291_v58 = vrot.slane %v290_v56, 2 }
  0xa6   :  { %v292_v63 = vadd.f32 %v291_v58, %v290_v56 }
  0xa8   :  { %v293_v11 = vrot.slane %v292_v63, 1 }
  0xaa   :  { %v294_v18 = vadd.f32 %v293_v11, %v292_v63 }
  0xac   :  { %1331 = vpush %v294_v18 }
  0xb2   :  { %v238_v47 = vpop.permute.xlu0 %237 }
  0xd2   :  { %v221_v34 = vpop.f32.mrf.mxu0 }
  0xd3   :  { %v224_v49 = vmul.f32 %v221_v34, %v202_v23  ;;  %v233_v23 = vpop.permute.xlu1 %232 }
  0xd5   :  { %1226 = vmatpush.msk.msrb.mxu0 %vm250_vm4, %v224_v49 }
  0xd6   :  { %1227 = vmatmul.msk.f32.vlgmr.msrb.gmra.mxu0 %vm240_vm5, %v83_v33 }
  0xdb   :  { %v228_v46 = vpop.permute.xlu1 %227 }
  0xdd   :  { %s1332_s24 = spop %1331 }
  0xde   :  { %1228 = vmatmul.msk.f32.gmra.mxu0 %vm240_vm5, %v84_v50  ;;  %v296_v20 = vstv %s1332_s24 }
  0xdf   :  { %1367 = vrsqrt.f32 %v296_v20  ;;  %vm304_vm6 = vcmp.eq.f32.partialorder %v296_v20, inf  ;;  %v307_v22 = vand.u32 2147483648, %v296_v20  ;;  %vm306_vm7 = vcmp.eq.f32.partialorder %v296_v20, 0.0 }
  0xe5   :  { %v1368_v51 = vpop.eup %1367 }
  0xe6   :  { %1229 = vmatmul.msk.f32.gmra.mxu0 %vm240_vm5, %v85_v32  ;;  %v298_v19 = vmul.f32 %v1368_v51, %v296_v20 }
  0xe8   :  { %v299_v16 = vmul.f32 %v1368_v51, %v298_v19 }
  0xea   :  { %v300_v52 = vmul.f32 0.5, %v299_v16 }
  0xec   :  { %v301_v0 = vsub.f32 1.5, %v300_v52 }
  0xee   :  { %v302_v13 = vmul.f32 %v1368_v51, %v301_v0 }
  0xf0   :  { %v303_v26 = vmul.f32 %v302_v13, %v296_v20 }
  0xf2   :  { %v305_v35 = vsel %vm304_vm6, %v296_v20, %v303_v26 }
  0xf3   :  { %v308_v44 = vsel %vm306_vm7, %v307_v22, %v305_v35 }
  0xf4   :  { %1333 = vpush %v308_v44 }
 0x125   :  { %s1334_s2 = spop %1333 }
 0x126   :  { %s310_s25 = smax.f32 %s1424_s0, %s1334_s2 }
 0x127   :  { %v339_v34 = vstv %s310_s25 }
 0x128   :  { %1369 = vrcp.f32 %v339_v34  ;;  %vm345_vm10 = vweird.f32 %v339_v34  ;;  %v351_v20 = vand.u32 2147483648, %v339_v34  ;;  %v349_v19 = vand.u32 2147483647, %v339_v34 }
 0x12a   :  { %v352_v16 = vor.u32 1.1754944e-38, %v351_v20  ;;  %vm350_vm13 = vcmp.eq.f32.partialorder %v349_v19, 8.507059e+37 }
 0x12e   :  { %v1370_v49 = vpop.eup %1369 }
 0x12f   :  { %v341_v33 = vmul.f32 %v1370_v49, %v339_v34  ;;  %vm346_vm11 = vweird.f32 %v1370_v49 }
 0x130   :  { %vm347_vm12 = vmor %vm345_vm10, %vm346_vm11 }
 0x131   :  { %v342_v50 = vsub.f32 1.0, %v341_v33 }
 0x133   :  { %v343_v32 = vmul.f32 %v1370_v49, %v342_v50 }
 0x135   :  { %v344_v51 = vadd.f32 %v1370_v49, %v343_v32 }
 0x137   :  { %v348_v52 = vsel %vm347_vm12, %v1370_v49, %v344_v51  ;;  %vm2155_vm12 = vcmp.eq.s32.totalorder %v1509_v1, 0 }
 0x153   :  { %v271_v59 = vpop.f32.mrf.mxu0 }
 0x154   :  { %v1721_v61 = vadd.f32 %v271_v59, %v228_v46  ;;  %v353_v59 = vsel %vm350_vm13, %v352_v16, %v348_v52  ;;  %vm2156_vm13 = vcmp.eq.s32.totalorder %v1511_v2, 0 }
 0x156   :  { %v280_v18 = vmax.f32 %v1721_v61, 0.0 }
 0x15b   :  { %v274_v37 = vpop.f32.mrf.mxu0 }
 0x15c   :  { %v1717_v56 = vadd.f32 %v274_v37, %v233_v23 }
 0x15e   :  { %v281_v11 = vmax.f32 %v1717_v56, 0.0 }
 0x163   :  { %v277_v54 = vpop.f32.mrf.mxu0 }
 0x164   :  { %v1719_v58 = vadd.f32 %v277_v54, %v238_v47 }
 0x166   :  { %v282_v63 = vmax.f32 %v1719_v58, 0.0 }
 0x168   :  { %1230 = vmatpush.msk.msra.mxu2 %vm2158_vm8, %v282_v63 }
 0x16a   :  { %333 = vmatpush.msra.mxu2 %v281_v11 }
 0x16c   :  { %334 = vmatpush.msra.mxu2 %v280_v18 }
 0x16d   :  { %1231 = vmatmul.msk.f32.vlgmr.msra.gmra.mxu2 %vm2157_vm9, %v1689_v57 }
 0x1f0   :  { %v336_v57 = vpop.f32.mrf.mxu2 }
 0x1f1   :  { %v354_v0 = vmul.f32 %v353_v59, %v336_v57 }
 0x1f3   :  { %1371 = vtanh.f32 %v354_v0 }
 0x1f9   :  { %v1736_v13 = vpop.eup %1371 }
 0x1fa   :  { %v361_v22 = vsel %vm2154_vm14, %v1736_v13, -inf }
 0x1fb   :  { %362 = vmax.xlane.f32.xlu2 %v361_v22 }
 0x26e   :  { %v363_v23 = vpop.xlane.xlu2 %362 }
 0x26f   :  { %v364_v26 = vrot.slane %v363_v23, 4 }
 0x271   :  { %v365_v35 = vmax.f32 %v363_v23, %v364_v26 }
 0x273   :  { %v366_v37 = vrot.slane %v365_v35, 2 }
 0x275   :  { %v367_v44 = vmax.f32 %v365_v35, %v366_v37 }
 0x277   :  { %v368_v46 = vrot.slane %v367_v44, 1 }
 0x279   :  { %v369_v47 = vmax.f32 %v367_v44, %v368_v46 }
 0x27b   :  { %1335 = vpush %v369_v47 }
 0x2ac   :  { %s1336_s4 = spop %1335 }
 0x2ad   :  { %v371_v54 = vstv %s1336_s4 }
 0x2ae   :  { %vm372_vm15 = vcmp.eq.f32.partialorder %v1736_v13, %v371_v54 }
 0x2af   :  { %v373_v34 = vsel %vm372_vm15, %v1511_v2, 128  ;;  %vm442_vm15 = vcmp.eq.s32.totalorder %v1509_v1, 1 }
 0x2b0   :  { %v374_v49 = vsel %vm2154_vm14, %v373_v34, 2147483647 }
 0x2b1   :  { %v376_v33 = vshra.s32 %v374_v49, 16  ;;  %v375_v32 = vand.u32 65535, %v374_v49 }
 0x2b3   :  { %v378_v50 = vcvt.s32.f32 %v376_v33  ;;  %v377_v51 = vcvt.s32.f32 %v375_v32 }
 0x2b5   :  { %379 = vmin.xlane.f32.xlu2 %v378_v50 }
 0x328   :  { %v380_v20 = vpop.xlane.xlu2 %379 }
 0x329   :  { %vm381_vm0 = vcmp.eq.f32.partialorder %v378_v50, %v380_v20  ;;  %v386_v16 = vcvt.f32.s32 %v380_v20 }
 0x32a   :  { %v382_v19 = vsel %vm381_vm0, %v377_v51, inf  ;;  %vm450_vm0 = vcmp.eq.s32.totalorder %v1511_v2, 1 }
 0x32b   :  { %383 = vmin.xlane.f32.xlu1 %v382_v19  ;;  %v387_v57 = vshll.u32 %v386_v16, 16 }
 0x39e   :  { %v384_v52 = vpop.xlane.xlu1 %383 }
 0x39f   :  { %v385_v59 = vcvt.f32.s32 %v384_v52 }
 0x3a1   :  { %v388_v0 = vadd.s32 %v387_v57, %v385_v59 }
 0x3a3   :  { %v389_v22 = vrot.slane %v388_v0, 4 }
 0x3a5   :  { %vm390_vm1 = vcmp.lt.s32.totalorder %v388_v0, %v389_v22 }
 0x3a6   :  { %v391_v23 = vsel %vm390_vm1, %v388_v0, %v389_v22 }
 0x3a7   :  { %v392_v26 = vrot.slane %v391_v23, 2 }
 0x3a9   :  { %vm393_vm2 = vcmp.lt.s32.totalorder %v391_v23, %v392_v26 }
 0x3aa   :  { %v394_v35 = vsel %vm393_vm2, %v391_v23, %v392_v26 }
 0x3ab   :  { %v395_v37 = vrot.slane %v394_v35, 1 }
 0x3ad   :  { %vm396_vm3 = vcmp.lt.s32.totalorder %v394_v35, %v395_v37 }
 0x3ae   :  { %v397_v44 = vsel %vm396_vm3, %v394_v35, %v395_v37 }
 0x3af   :  { %1337 = vpush %v397_v44 }
 0x3e0   :  { %s1338_s26 = spop %1337 }
 0x3e1   :  { %v399_v46 = vstv %s1338_s26 }
 0x3e2   :  { %vm400_vm4 = vcmp.eq.s32.totalorder %v1511_v2, %v399_v46 }
 0x3e3   :  { %v401_v47 = vsel %vm400_vm4, -inf, %v1736_v13 }
 0x3e4   :  { %v402_v54 = vsel %vm2154_vm14, %v401_v47, -inf }
 0x3e5   :  { %403 = vmax.xlane.f32.xlu2 %v402_v54 }
 0x458   :  { %v404_v34 = vpop.xlane.xlu2 %403 }
 0x459   :  { %v405_v49 = vrot.slane %v404_v34, 4 }
 0x45b   :  { %v406_v33 = vmax.f32 %v404_v34, %v405_v49 }
 0x45d   :  { %v407_v50 = vrot.slane %v406_v33, 2 }
 0x45f   :  { %v408_v32 = vmax.f32 %v406_v33, %v407_v50 }
 0x461   :  { %v409_v20 = vrot.slane %v408_v32, 1 }
 0x463   :  { %v410_v51 = vmax.f32 %v408_v32, %v409_v20 }
 0x465   :  { %1339 = vpush %v410_v51  ;;  %v441_v51 = vsel %vm2155_vm12, %v399_v46, 0 }
 0x496   :  { %s1340_s27 = spop %1339 }
 0x497   :  { %v412_v19 = vstv %s1340_s27 }
 0x498   :  { %vm413_vm5 = vcmp.eq.f32.partialorder %v401_v47, %v412_v19  ;;  %v449_v19 = vsel %vm2156_vm13, %v399_v46, 0  ;;  %v356_v46 = vperm.slane %v1736_v13, 0 }
 0x499   :  { %v414_v16 = vsel %vm413_vm5, %v1511_v2, 128 }
 0x49a   :  { %v415_v52 = vsel %vm2154_vm14, %v414_v16, 2147483647  ;;  %v357_v13 = vmul.f32 %v356_v46, %v280_v18  ;;  %v358_v61 = vmul.f32 %v356_v46, %v281_v11 }
 0x49b   :  { %v417_v57 = vshra.s32 %v415_v52, 16  ;;  %v416_v0 = vand.u32 65535, %v415_v52 }
 0x49d   :  { %v419_v59 = vcvt.s32.f32 %v417_v57  ;;  %v418_v23 = vcvt.s32.f32 %v416_v0 }
 0x49f   :  { %420 = vmin.xlane.f32.xlu2 %v419_v59 }
 0x512   :  { %v421_v22 = vpop.xlane.xlu2 %420 }
 0x513   :  { %vm422_vm6 = vcmp.eq.f32.partialorder %v419_v59, %v421_v22  ;;  %v427_v35 = vcvt.f32.s32 %v421_v22  ;;  %v1425_v59 = vmov 1.0  }
 0x514   :  { %v423_v26 = vsel %vm422_vm6, %v418_v23, inf }
 0x515   :  { %424 = vmin.xlane.f32.xlu2 %v423_v26  ;;  %v428_v44 = vshll.u32 %v427_v35, 16 }
 0x588   :  { %v425_v37 = vpop.xlane.xlu2 %424 }
 0x589   :  { %v426_v54 = vcvt.f32.s32 %v425_v37 }
 0x58b   :  { %v429_v34 = vadd.s32 %v428_v44, %v426_v54 }
 0x58d   :  { %v430_v49 = vrot.slane %v429_v34, 4 }
 0x58f   :  { %vm431_vm7 = vcmp.lt.s32.totalorder %v429_v34, %v430_v49 }
 0x590   :  { %v432_v47 = vsel %vm431_vm7, %v429_v34, %v430_v49 }
 0x591   :  { %v433_v33 = vrot.slane %v432_v47, 2 }
 0x593   :  { %vm434_vm10 = vcmp.lt.s32.totalorder %v432_v47, %v433_v33 }
 0x594   :  { %v435_v50 = vsel %vm434_vm10, %v432_v47, %v433_v33 }
 0x595   :  { %v436_v32 = vrot.slane %v435_v50, 1 }
 0x597   :  { %vm437_vm11 = vcmp.lt.s32.totalorder %v435_v50, %v436_v32 }
 0x598   :  { %v438_v20 = vsel %vm437_vm11, %v435_v50, %v436_v32 }
 0x599   :  { %1341 = vpush %v438_v20 }
 0x5ca   :  { %s1342_s28 = spop %1341 }
 0x5cb   :  { %v443_v16 = vstv %s1342_s28 }
 0x5cc   :  { %v1756_v52 = vsel %vm442_vm15, %v443_v16, %v441_v51  ;;  %v1758_v57 = vsel %vm450_vm0, %v443_v16, %v449_v19 }
 0x5cd   :  { %vm467_vm1 = vcmp.eq.s32.totalorder %v1514_v3, %v1758_v57  ;;  %vm466_vm2 = vcmp.eq.s32.totalorder %v1517_v4, %v1758_v57  ;;  %vm465_vm3 = vcmp.eq.s32.totalorder %v1520_v5, %v1758_v57  ;;  %vm464_vm4 = vcmp.eq.s32.totalorder %v1523_v6, %v1758_v57 }
 0x5ce   :  { %1249 = vmatpush.msk.msra.mxu3 %vm467_vm1, %v1425_v59  ;;  %1265 = vmatpush.msk.msra.mxu1 %vm467_vm1, %v1425_v59  ;;  %vm463_vm5 = vcmp.eq.s32.totalorder %v1526_v7, %v1758_v57  ;;  %vm462_vm6 = vcmp.eq.s32.totalorder %v1529_v8, %v1758_v57  ;;  %vm461_vm7 = vcmp.eq.s32.totalorder %v1544_v14, %v1758_v57 }
 0x5cf   :  { %vm460_vm10 = vcmp.eq.s32.totalorder %v1547_v15, %v1758_v57  ;;  %vm459_vm11 = vcmp.eq.s32.totalorder %v1583_v27, %v1758_v57  ;;  %vm458_vm15 = vcmp.eq.s32.totalorder %v1614_v38, %v1758_v57  ;;  %vm457_vm0 = vcmp.eq.s32.totalorder %v1607_v36, %v1758_v57  ;;  %v611_v36 = vld [vmem:[%s2143_s5] sm:$0xff]  ;;  %v612_v38 = vld [vmem:[%s2143_s5 + $0x8] sm:$0x7f] }
 0x5d0   :  { %1250 = vmatpush.msk.msra.mxu3 %vm466_vm2, %v1425_v59  ;;  %1266 = vmatpush.msk.msra.mxu1 %vm466_vm2, %v1425_v59  ;;  %vm456_vm14 = vcmp.eq.s32.totalorder %v1586_v28, %v1758_v57  ;;  %vm455_vm12 = vcmp.eq.s32.totalorder %v1589_v29, %v1758_v57  ;;  %vm454_vm13 = vcmp.eq.s32.totalorder %v1595_v31, %v1758_v57 }
 0x5d1   :  { %vm453_vm9 = vcmp.eq.s32.totalorder %v1592_v30, %v1758_v57  ;;  %vm452_vm8 = vcmp.eq.s32.totalorder %v1509_v1, %v1758_v57  ;;  %v359_v3 = vmul.f32 %v356_v46, %v282_v63  ;;  %v613_v63 = vld [vmem:[%s2144_s6] sm:$0xff] }
 0x5d2   :  { %1251 = vmatpush.msk.msra.mxu3 %vm465_vm3, %v1425_v59  ;;  %1267 = vmatpush.msk.msra.mxu1 %vm465_vm3, %v1425_v59 }
 0x5d4   :  { %1252 = vmatpush.msk.msra.mxu3 %vm464_vm4, %v1425_v59  ;;  %1268 = vmatpush.msk.msra.mxu1 %vm464_vm4, %v1425_v59 }
 0x5d6   :  { %1253 = vmatpush.msk.msra.mxu3 %vm463_vm5, %v1425_v59  ;;  %1269 = vmatpush.msk.msra.mxu1 %vm463_vm5, %v1425_v59 }
 0x5d8   :  { %1254 = vmatpush.msk.msra.mxu3 %vm462_vm6, %v1425_v59  ;;  %1270 = vmatpush.msk.msra.mxu1 %vm462_vm6, %v1425_v59 }
 0x5da   :  { %1255 = vmatpush.msk.msra.mxu3 %vm461_vm7, %v1425_v59  ;;  %1271 = vmatpush.msk.msra.mxu1 %vm461_vm7, %v1425_v59 }
 0x5dc   :  { %1256 = vmatpush.msk.msra.mxu3 %vm460_vm10, %v1425_v59  ;;  %1272 = vmatpush.msk.msra.mxu1 %vm460_vm10, %v1425_v59 }
 0x5de   :  { %1257 = vmatpush.msk.msra.mxu3 %vm459_vm11, %v1425_v59  ;;  %1273 = vmatpush.msk.msra.mxu1 %vm459_vm11, %v1425_v59 }
 0x5e0   :  { %1258 = vmatpush.msk.msra.mxu3 %vm458_vm15, %v1425_v59  ;;  %1274 = vmatpush.msk.msra.mxu1 %vm458_vm15, %v1425_v59 }
 0x5e2   :  { %1259 = vmatpush.msk.msra.mxu3 %vm457_vm0, %v1425_v59  ;;  %1275 = vmatpush.msk.msra.mxu1 %vm457_vm0, %v1425_v59 }
 0x5e4   :  { %1260 = vmatpush.msk.msra.mxu3 %vm456_vm14, %v1425_v59  ;;  %1276 = vmatpush.msk.msra.mxu1 %vm456_vm14, %v1425_v59 }
 0x5e6   :  { %1261 = vmatpush.msk.msra.mxu3 %vm455_vm12, %v1425_v59  ;;  %1277 = vmatpush.msk.msra.mxu1 %vm455_vm12, %v1425_v59 }
 0x5e8   :  { %1262 = vmatpush.msk.msra.mxu3 %vm454_vm13, %v1425_v59  ;;  %1278 = vmatpush.msk.msra.mxu1 %vm454_vm13, %v1425_v59 }
 0x5ea   :  { %1263 = vmatpush.msk.msra.mxu3 %vm453_vm9, %v1425_v59  ;;  %1279 = vmatpush.msk.msra.mxu1 %vm453_vm9, %v1425_v59 }
 0x5ec   :  { %1264 = vmatpush.msk.msra.mxu3 %vm452_vm8, %v1425_v59  ;;  %1280 = vmatpush.msk.msra.mxu1 %vm452_vm8, %v1425_v59 }
 0x5ed   :  { %516 = vmatmul.f32.vlgmr.msra.gmra.mxu3 %v357_v13  ;;  %542 = vmatmul.f32.vlgmr.msra.gmra.mxu1 %v1618_v39 }
 0x5ee   :  { %1315 = vmatpush.msk.msrb.mxu3 %vm467_vm1, %v1425_v59  ;;  %vm616_vm1 = vcmask 9216  }
 0x5f0   :  { %1316 = vmatpush.msk.msrb.mxu3 %vm466_vm2, %v1425_v59  ;;  %vm675_vm2 = vcmask 1041408  }
 0x5f2   :  { %1317 = vmatpush.msk.msrb.mxu3 %vm465_vm3, %v1425_v59 }
 0x5f4   :  { %1318 = vmatpush.msk.msrb.mxu3 %vm464_vm4, %v1425_v59 }
 0x5f5   :  { %519 = vmatmul.f32.gmra.mxu3 %v358_v61  ;;  %545 = vmatmul.f32.gmra.mxu1 %v1620_v40  ;;  %v2022_v40 = vld [vmem:[%s2145_s7] sm:$0x1] }
 0x5f6   :  { %1319 = vmatpush.msk.msrb.mxu3 %vm463_vm5, %v1425_v59 }
 0x5f8   :  { %1320 = vmatpush.msk.msrb.mxu3 %vm462_vm6, %v1425_v59  ;;  %vm668_vm6 = vcmask 15360  }
 0x5fa   :  { %1321 = vmatpush.msk.msrb.mxu3 %vm461_vm7, %v1425_v59 }
 0x5fc   :  { %1322 = vmatpush.msk.msrb.mxu3 %vm460_vm10, %v1425_v59 }
 0x5fd   :  { %522 = vmatmul.f32.gmra.mxu3 %v359_v3  ;;  %548 = vmatmul.f32.gmra.mxu1 %v1622_v41  ;;  %v717_v41 = vmul.f32 %v2022_v40, %v2022_v40 }
 0x5fe   :  { %1323 = vmatpush.msk.msrb.mxu3 %vm459_vm11, %v1425_v59  ;;  %vm748_vm11 = vcmask 1046528  }
 0x600   :  { %1324 = vmatpush.msk.msrb.mxu3 %vm458_vm15, %v1425_v59  ;;  %vm744_vm15 = vcmask 121856  }
 0x602   :  { %1325 = vmatpush.msk.msrb.mxu3 %vm457_vm0, %v1425_v59 }
 0x604   :  { %1326 = vmatpush.msk.msrb.mxu3 %vm456_vm14, %v1425_v59 }
 0x605   :  { %551 = vmatmul.f32.gmra.mxu1 %v1635_v43 }
 0x606   :  { %1327 = vmatpush.msk.msrb.mxu3 %vm455_vm12, %v1425_v59  ;;  %vm445_vm12 = vcmp.eq.s32.totalorder %v1511_v2, %v1756_v52 }
 0x608   :  { %1328 = vmatpush.msk.msrb.mxu3 %vm454_vm13, %v1425_v59  ;;  %vm718_vm13 = vcmask 114688  }
 0x60a   :  { %1329 = vmatpush.msk.msrb.mxu3 %vm453_vm9, %v1425_v59  ;;  %vm2160_vm9 = vcmask 162816  }
 0x60b   :  { %vm2161_vm14 = vmmov %vm2160_vm9 }
 0x60c   :  { %1330 = vmatpush.msk.msrb.mxu3 %vm452_vm8, %v1425_v59  ;;  %vm2159_vm8 = vcmask 1043456  }
 0x60d   :  { %578 = vmatmul.f32.vlgmr.msrb.gmra.mxu3 %v1568_v21  ;;  %554 = vmatmul.f32.gmra.mxu1 %v1654_v53 }
 0x615   :  { %581 = vmatmul.f32.gmra.mxu3 %v1552_v17  ;;  %557 = vmatmul.f32.gmra.mxu1 %v1668_v60 }
 0x61d   :  { %584 = vmatmul.f32.gmra.mxu3 %v1540_v12  ;;  %560 = vmatmul.f32.gmra.mxu1 %v1674_v62 }
 0x625   :  { %587 = vmatmul.f32.gmra.mxu3 %v1537_v9  ;;  %563 = vmatmul.f32.gmra.mxu1 %v1660_v55 }
 0x62d   :  { %566 = vmatmul.f32.gmra.mxu1 %v1643_v48 }
 0x635   :  { %569 = vmatmul.f32.gmra.mxu1 %v1624_v42  ;;  %v719_v42 = vsel %vm718_vm13, %v717_v41, 0.0 }
 0x636   :  { %720 = vadd.xlane.f32.xlu2 %v719_v42 }
 0x63d   :  { %572 = vmatmul.f32.gmra.mxu1 %v1575_v25 }
 0x645   :  { %575 = vmatmul.f32.gmra.mxu1 %v1573_v24 }
 0x64e   :  { %706 = vperm.xlu2 %1364, %v613_v63  }
 0x66a   :  { %v543_v4 = vpop.f32.mrf.mxu1 }
 0x670   :  { %v517_v5 = vpop.f32.mrf.mxu3 }
 0x672   :  { %v546_v6 = vpop.f32.mrf.mxu1 }
 0x678   :  { %v520_v7 = vpop.f32.mrf.mxu3 }
 0x67a   :  { %v549_v8 = vpop.f32.mrf.mxu1 }
 0x680   :  { %v523_v12 = vpop.f32.mrf.mxu3 }
 0x681   :  { %1282 = vmatpush.msk.msra.mxu0 %vm2159_vm8, %v523_v12 }
 0x682   :  { %v552_v14 = vpop.f32.mrf.mxu1 }
 0x683   :  { %657 = vmatpush.msra.mxu0 %v520_v7 }
 0x685   :  { %658 = vmatpush.msra.mxu0 %v517_v5 }
 0x686   :  { %1283 = vmatmul.msk.f32.vlgmr.msra.gmra.mxu0 %vm2160_vm9, %v611_v36 }
 0x68a   :  { %v555_v9 = vpop.f32.mrf.mxu1 }
 0x68e   :  { %1284 = vmatmul.msk.f32.gmra.mxu0 %vm2161_vm14, %v612_v38 }
 0x690   :  { %v579_v15 = vpop.f32.mrf.mxu3 }
 0x692   :  { %v558_v17 = vpop.f32.mrf.mxu1 }
 0x698   :  { %v582_v21 = vpop.f32.mrf.mxu3 }
 0x69a   :  { %v561_v27 = vpop.f32.mrf.mxu1 }
 0x6a0   :  { %v585_v28 = vpop.f32.mrf.mxu3 }
 0x6a2   :  { %v564_v25 = vpop.f32.mrf.mxu1 }
 0x6a8   :  { %v588_v29 = vpop.f32.mrf.mxu3 }
 0x6a9   :  { %591 = vmatpush.msrb.mxu2 %v588_v29  ;;  %v721_v47 = vpop.xlane.xlu2 %720 }
 0x6aa   :  { %v567_v24 = vpop.f32.mrf.mxu1  ;;  %v722_v33 = vrot.slane %v721_v47, 4 }
 0x6ab   :  { %592 = vmatpush.msrb.mxu2 %v585_v28 }
 0x6ac   :  { %v723_v50 = vadd.f32 %v722_v33, %v721_v47 }
 0x6ad   :  { %593 = vmatpush.msrb.mxu2 %v582_v21 }
 0x6ae   :  { %v724_v32 = vrot.slane %v723_v50, 2 }
 0x6af   :  { %594 = vmatpush.msrb.mxu2 %v579_v15 }
 0x6b0   :  { %v725_v20 = vadd.f32 %v724_v32, %v723_v50 }
 0x6b1   :  { %v707_v15 = vpop.permute.xlu2 %706 }
 0x6b2   :  { %v570_v30 = vpop.f32.mrf.mxu1  ;;  %v726_v51 = vrot.slane %v725_v20, 1 }
 0x6b4   :  { %v727_v19 = vadd.f32 %v726_v51, %v725_v20 }
 0x6b6   :  { %1343 = vpush %v727_v19 }
 0x6ba   :  { %v573_v31 = vpop.f32.mrf.mxu1 }
 0x6c2   :  { %v576_v39 = vpop.f32.mrf.mxu1 }
 0x6c3   :  { %595 = vmatpush.msrb.mxu2 %v576_v39 }
 0x6c5   :  { %596 = vmatpush.msrb.mxu2 %v573_v31 }
 0x6c7   :  { %597 = vmatpush.msrb.mxu2 %v570_v30 }
 0x6c9   :  { %598 = vmatpush.msrb.mxu2 %v567_v24 }
 0x6cb   :  { %599 = vmatpush.msrb.mxu2 %v564_v25 }
 0x6cd   :  { %600 = vmatpush.msrb.mxu2 %v561_v27 }
 0x6cf   :  { %601 = vmatpush.msrb.mxu2 %v558_v17 }
 0x6d1   :  { %602 = vmatpush.msrb.mxu2 %v555_v9  ;;  %v712_v9 = vpop.permute.xlu0 %711 }
 0x6d3   :  { %603 = vmatpush.msrb.mxu2 %v552_v14 }
 0x6d5   :  { %604 = vmatpush.msrb.mxu2 %v549_v8 }
 0x6d7   :  { %605 = vmatpush.msrb.mxu2 %v546_v6 }
 0x6d9   :  { %606 = vmatpush.msrb.mxu2 %v543_v4 }
 0x6da   :  { %1281 = vmatmul.msk.f32.vlgmr.msrb.gmra.mxu2 %vm445_vm12, %v1425_v59  ;;  %vm792_vm12 = vcmask 8192  }
 0x6e7   :  { %s1344_s6 = spop %1343 }
 0x6e8   :  { %v729_v16 = vstv %s1344_s6 }
 0x6e9   :  { %vm737_vm7 = vcmp.eq.f32.partialorder %v729_v16, inf  ;;  %v740_v4 = vand.u32 2147483648, %v729_v16  ;;  %vm739_vm10 = vcmp.eq.f32.partialorder %v729_v16, 0.0 }
 0x703   :  { %v660_v35 = vpop.f32.mrf.mxu0 }
 0x70b   :  { %v663_v34 = vpop.f32.mrf.mxu0 }
 0x75d   :  { %v2026_v43 = vpop.f32.mrf.mxu2 }
 0x75e   :  { %v615_v48 = vadd.f32 %v1639_v45, %v2026_v43 }
 0x760   :  { %v617_v53 = vsel %vm616_vm1, %v615_v48, 0.0  ;;  %1285 = vmatpush.msk.msra.mxu2 %vm675_vm2, %v615_v48 }
 0x761   :  { %v618_v55 = vrot.slane %v617_v53, 4 }
 0x763   :  { %v619_v60 = vadd.f32 %v618_v55, %v617_v53 }
 0x765   :  { %v620_v62 = vrot.slane %v619_v60, 2 }
 0x767   :  { %v621_v56 = vadd.f32 %v620_v62, %v619_v60 }
 0x769   :  { %v622_v58 = vrot.slane %v621_v56, 1 }
 0x76b   :  { %v623_v11 = vadd.f32 %v622_v58, %v621_v56 }
 0x76d   :  { %1373 = vrsqrt.f32 %v623_v11  ;;  %vm630_vm4 = vweird.f32 %v623_v11 }
 0x76e   :  { %1375 = vrsqrt.f32 %v729_v16 }
 0x773   :  { %v1374_v18 = vpop.eup %1373 }
 0x774   :  { %v625_v0 = vmul.f32 %v1374_v18, %v623_v11  ;;  %vm631_vm3 = vweird.f32 %v1374_v18  ;;  %v1376_v52 = vpop.eup %1375 }
 0x775   :  { %vm632_vm5 = vmor %vm630_vm4, %vm631_vm3  ;;  %v731_v57 = vmul.f32 %v1376_v52, %v729_v16 }
 0x776   :  { %v626_v22 = vmul.f32 %v1374_v18, %v625_v0 }
 0x777   :  { %v732_v59 = vmul.f32 %v1376_v52, %v731_v57 }
 0x778   :  { %v627_v23 = vmul.f32 0.5, %v626_v22 }
 0x779   :  { %v733_v46 = vmul.f32 0.5, %v732_v59 }
 0x77a   :  { %v628_v26 = vsub.f32 1.5, %v627_v23 }
 0x77b   :  { %v734_v13 = vsub.f32 1.5, %v733_v46 }
 0x77c   :  { %v629_v37 = vmul.f32 %v1374_v18, %v628_v26 }
 0x77d   :  { %v735_v3 = vmul.f32 %v1376_v52, %v734_v13 }
 0x77e   :  { %v633_v44 = vsel %vm632_vm5, %v1374_v18, %v629_v37 }
 0x77f   :  { %v666_v54 = vmul.f32 %v660_v35, %v633_v44  ;;  %v667_v49 = vmul.f32 %v663_v34, %v633_v44  ;;  %v736_v5 = vmul.f32 %v735_v3, %v729_v16 }
 0x781   :  { %1286 = vmatmul.msk.f32.vlgmr.msra.gmra.mxu2 %vm668_vm6, %v666_v54  ;;  %v738_v6 = vsel %vm737_vm7, %v729_v16, %v736_v5  ;;  %vm2162_vm7 = vcmp.eq.s32.totalorder %v1511_v2, 0 }
 0x782   :  { %v741_v7 = vsel %vm739_vm10, %v740_v4, %v738_v6  ;;  %v895_v6 = vld [vmem:[%s2146_s8] sm:$0xff] }
 0x783   :  { %1345 = vpush %v741_v7 }
 0x789   :  { %1287 = vmatmul.msk.f32.gmra.mxu2 %vm668_vm6, %v667_v49 }
 0x7b4   :  { %s1346_s19 = spop %1345 }
 0x7b5   :  { %s743_s20 = smax.f32 %s1424_s0, %s1346_s19 }
 0x7b6   :  { %v772_v27 = vstv %s743_s20 }
 0x7b7   :  { %1377 = vrcp.f32 %v772_v27  ;;  %vm778_vm0 = vweird.f32 %v772_v27  ;;  %v784_v30 = vand.u32 2147483648, %v772_v27  ;;  %v782_v36 = vand.u32 2147483647, %v772_v27 }
 0x7b9   :  { %v785_v38 = vor.u32 1.1754944e-38, %v784_v30  ;;  %vm783_vm14 = vcmp.eq.f32.partialorder %v782_v36, 8.507059e+37 }
 0x7bd   :  { %v1378_v28 = vpop.eup %1377 }
 0x7be   :  { %v774_v25 = vmul.f32 %v1378_v28, %v772_v27  ;;  %vm779_vm8 = vweird.f32 %v1378_v28 }
 0x7bf   :  { %vm780_vm9 = vmor %vm778_vm0, %vm779_vm8  ;;  %vm2163_vm0 = vcmp.eq.s32.totalorder %v1509_v1, 0 }
 0x7c0   :  { %v775_v29 = vsub.f32 1.0, %v774_v25 }
 0x7c2   :  { %v776_v24 = vmul.f32 %v1378_v28, %v775_v29 }
 0x7c4   :  { %v777_v31 = vadd.f32 %v1378_v28, %v776_v24 }
 0x7c6   :  { %v781_v39 = vsel %vm780_vm9, %v1378_v28, %v777_v31  ;;  %vm2164_vm9 = vcmask 1040384  }
 0x804   :  { %v696_v61 = vpop.f32.mrf.mxu2 }
 0x805   :  { %v702_v12 = vmul.f32 %v696_v61, %v633_v44 }
 0x807   :  { %v2038_v21 = vadd.f32 %v707_v15, %v702_v12 }
 0x80c   :  { %v699_v8 = vpop.f32.mrf.mxu2 }
 0x80d   :  { %v703_v14 = vmul.f32 %v699_v8, %v633_v44 }
 0x80f   :  { %v2036_v17 = vadd.f32 %v712_v9, %v703_v14 }
 0x811   :  { %1288 = vmatpush.msk.msrb.mxu0 %vm748_vm11, %v2036_v17 }
 0x813   :  { %767 = vmatpush.msrb.mxu0 %v2038_v21 }
 0x814   :  { %1289 = vmatmul.msk.f32.vlgmr.msrb.gmra.mxu0 %vm744_vm15, %v2022_v40  ;;  %v786_v40 = vsel %vm783_vm14, %v785_v38, %v781_v39 }
 0x891   :  { %v769_v41 = vpop.f32.mrf.mxu0 }
 0x892   :  { %v787_v42 = vmul.f32 %v786_v40, %v769_v41 }
 0x894   :  { %1379 = vtanh.f32 %v787_v42 }
 0x89a   :  { %v1380_v48 = vpop.eup %1379 }
 0x89b   :  { %v793_v53 = vsel %vm792_vm12, %v1380_v48, -inf  ;;  %v789_v57 = vperm.slane %v1380_v48, 0 }
 0x89c   :  { %794 = vmax.xlane.f32.xlu0 %v793_v53 }
 0x89d   :  { %v790_v61 = vmul.f32 %v789_v57, %v2038_v21  ;;  %v791_v3 = vmul.f32 %v789_v57, %v2036_v17 }
 0x90f   :  { %v795_v55 = vpop.xlane.xlu0 %794 }
 0x910   :  { %v796_v60 = vrot.slane %v795_v55, 4 }
 0x912   :  { %v797_v62 = vmax.f32 %v795_v55, %v796_v60 }
 0x914   :  { %v798_v56 = vrot.slane %v797_v62, 2 }
 0x916   :  { %v799_v58 = vmax.f32 %v797_v62, %v798_v56 }
 0x918   :  { %v800_v63 = vrot.slane %v799_v58, 1 }
 0x91a   :  { %v801_v11 = vmax.f32 %v799_v58, %v800_v63 }
 0x91c   :  { %1347 = vpush %v801_v11 }
 0x94d   :  { %s1348_s3 = spop %1347 }
 0x94e   :  { %v803_v18 = vstv %s1348_s3 }
 0x94f   :  { %vm804_vm13 = vcmp.eq.f32.partialorder %v1380_v48, %v803_v18 }
 0x950   :  { %v805_v0 = vsel %vm804_vm13, %v1511_v2, 2  ;;  %vm971_vm13 = vcmask 7168  }
 0x951   :  { %v806_v22 = vsel %vm792_vm12, %v805_v0, 2147483647  ;;  %v898_v0 = vld [vmem:[%s2147_s9 + $0x8] sm:$0xf] }
 0x952   :  { %v808_v23 = vshra.s32 %v806_v22, 16  ;;  %v807_v35 = vand.u32 65535, %v806_v22 }
 0x954   :  { %v810_v26 = vcvt.s32.f32 %v808_v23  ;;  %v809_v44 = vcvt.s32.f32 %v807_v35 }
 0x956   :  { %811 = vmin.xlane.f32.xlu1 %v810_v26 }
 0x9c9   :  { %v812_v37 = vpop.xlane.xlu1 %811 }
 0x9ca   :  { %vm813_vm1 = vcmp.eq.f32.partialorder %v810_v26, %v812_v37  ;;  %v818_v34 = vcvt.f32.s32 %v812_v37 }
 0x9cb   :  { %v814_v54 = vsel %vm813_vm1, %v809_v44, inf  ;;  %v897_v44 = vld [vmem:[%s2147_s9] sm:$0xff] }
 0x9cc   :  { %815 = vmin.xlane.f32.xlu1 %v814_v54  ;;  %v819_v47 = vshll.u32 %v818_v34, 16 }
 0xa3f   :  { %v816_v49 = vpop.xlane.xlu1 %815 }
 0xa40   :  { %v817_v33 = vcvt.f32.s32 %v816_v49 }
 0xa42   :  { %v820_v50 = vadd.s32 %v819_v47, %v817_v33 }
 0xa44   :  { %v821_v32 = vrot.slane %v820_v50, 4 }
 0xa46   :  { %vm822_vm3 = vcmp.lt.s32.totalorder %v820_v50, %v821_v32 }
 0xa47   :  { %v823_v20 = vsel %vm822_vm3, %v820_v50, %v821_v32 }
 0xa48   :  { %v824_v51 = vrot.slane %v823_v20, 2 }
 0xa4a   :  { %vm825_vm4 = vcmp.lt.s32.totalorder %v823_v20, %v824_v51 }
 0xa4b   :  { %v826_v19 = vsel %vm825_vm4, %v823_v20, %v824_v51  ;;  %vm2166_vm4 = vcmask 1043456  }
 0xa4c   :  { %v827_v16 = vrot.slane %v826_v19, 1 }
 0xa4e   :  { %vm828_vm5 = vcmp.lt.s32.totalorder %v826_v19, %v827_v16 }
 0xa4f   :  { %v829_v52 = vsel %vm828_vm5, %v826_v19, %v827_v16  ;;  %vm1036_vm5 = vcmask 97280  }
 0xa50   :  { %1349 = vpush %v829_v52 }
 0xa81   :  { %s1350_s21 = spop %1349 }
 0xa82   :  { %v831_v59 = vstv %s1350_s21 }
 0xa83   :  { %v836_v46 = vsel %vm2162_vm7, %v831_v59, 0  ;;  %v832_v7 = vsel %vm2163_vm0, %v831_v59, 0 }
 0xa84   :  { %vm837_vm10 = vcmp.eq.s32.totalorder %v1509_v1, %v836_v46  ;;  %vm833_vm8 = vcmp.eq.s32.totalorder %v1511_v2, %v832_v7  ;;  %v2079_v1 = vld [vmem:[%s2148_s10] sm:$0x1] }
 0xa85   :  { %v1291_v13 = vsel %vm837_vm10, 1.0, %v1422_v10  ;;  %v1290_v12 = vsel %vm833_vm8, 1.0, %v1422_v10  ;;  %v1009_v2 = vmul.f32 %v2079_v1, %v2079_v1  ;;  %v1083_v7 = vld [vmem:[%s2149_s11] sm:$0xff] }
 0xa86   :  { %1292 = vmatpush.msk.msrb.mxu2 %vm675_vm2, %v1291_v13 }
 0xa87   :  { %1293 = vmatmul.msk.f32.vlgmr.msrb.gmra.mxu2 %vm668_vm6, %v790_v61 }
 0xa88   :  { %1295 = vmatpush.msk.msra.mxu2 %vm675_vm2, %v1291_v13 }
 0xa8f   :  { %1294 = vmatmul.msk.f32.gmra.mxu2 %vm668_vm6, %v791_v3 }
 0xa97   :  { %1296 = vmatmul.msk.f32.vlgmr.msra.gmra.mxu2 %vm668_vm6, %v2026_v43  ;;  %v896_v43 = vld [vmem:[%s2146_s8 + $0x8] sm:$0xf] }
 0xb0a   :  { %v866_v4 = vpop.f32.mrf.mxu2 }
 0xb12   :  { %v869_v5 = vpop.f32.mrf.mxu2 }
 0xb13   :  { %1299 = vmatpush.msk.msrb.mxu2 %vm748_vm11, %v869_v5  ;;  %vm1010_vm11 = vcmask 90112  }
 0xb14   :  { %v1011_v10 = vsel %vm1010_vm11, %v1009_v2, 0.0  ;;  %vm2167_vm11 = vmmov %vm2166_vm4 }
 0xb15   :  { %960 = vmatpush.msrb.mxu2 %v866_v4  ;;  %1012 = vadd.xlane.f32.xlu2 %v1011_v10 }
 0xb16   :  { %1300 = vmatmul.msk.f32.vlgmr.msrb.gmra.mxu2 %vm744_vm15, %v895_v6 }
 0xb1a   :  { %v892_v8 = vpop.f32.mrf.mxu2 }
 0xb1b   :  { %1297 = vmatpush.msk.msra.mxu0 %vm675_vm2, %v892_v8  ;;  %v1084_v8 = vld [vmem:[%s2149_s11 + $0x8] sm:$0x3] }
 0xb1c   :  { %1298 = vmatmul.msk.f32.vlgmr.msra.gmra.mxu0 %vm668_vm6, %v1290_v12  ;;  %vm2165_vm6 = vmmov %vm2164_vm9 }
 0xb1e   :  { %1301 = vmatmul.msk.f32.gmra.mxu2 %vm744_vm15, %v896_v43 }
 0xb88   :  { %v1013_v38 = vpop.xlane.xlu2 %1012 }
 0xb89   :  { %v1014_v39 = vrot.slane %v1013_v38, 4 }
 0xb8b   :  { %v1015_v41 = vadd.f32 %v1014_v39, %v1013_v38 }
 0xb8d   :  { %v1016_v40 = vrot.slane %v1015_v41, 2 }
 0xb8f   :  { %v1017_v42 = vadd.f32 %v1016_v40, %v1015_v41 }
 0xb91   :  { %v1018_v48 = vrot.slane %v1017_v42, 1 }
 0xb93   :  { %v1019_v53 = vadd.f32 %v1018_v48, %v1017_v42 }
 0xb95   :  { %1351 = vpush %v1019_v53 }
 0xb99   :  { %v922_v14 = vpop.f32.mrf.mxu0  ;;  %v962_v29 = vpop.f32.mrf.mxu2 }
 0xb9a   :  { %v923_v9 = vadd.f32 %v1639_v45, %v922_v14  ;;  %v1086_v14 = vld [vmem:[%s2150_s12 + $0x8] sm:$0x3] }
 0xb9c   :  { %1381 = vrsqrt.f32 %v923_v9  ;;  %1302 = vmatpush.msk.msrb.mxu0 %vm2164_vm9, %v923_v9  ;;  %1310 = vmatpush.msk.msra.mxu2 %vm2165_vm6, %v923_v9  ;;  %vm932_vm14 = vweird.f32 %v923_v9  ;;  %vm1156_vm9 = vcmask 80896  }
 0xba1   :  { %v965_v31 = vpop.f32.mrf.mxu2 }
 0xba2   :  { %v1382_v15 = vpop.eup %1381 }
 0xba3   :  { %v927_v17 = vmul.f32 %v1382_v15, %v923_v9  ;;  %vm933_vm15 = vweird.f32 %v1382_v15 }
 0xba4   :  { %vm934_vm12 = vmor %vm932_vm14, %vm933_vm15 }
 0xba5   :  { %v928_v21 = vmul.f32 %v1382_v15, %v927_v17 }
 0xba7   :  { %v929_v27 = vmul.f32 0.5, %v928_v21  ;;  %v1085_v21 = vld [vmem:[%s2150_s12] sm:$0xff] }
 0xba9   :  { %v930_v28 = vsub.f32 1.5, %v929_v27 }
 0xbab   :  { %v931_v25 = vmul.f32 %v1382_v15, %v930_v28 }
 0xbad   :  { %v935_v24 = vsel %vm934_vm12, %v1382_v15, %v931_v25  ;;  %v1154_v25 = vld [vmem:[%s2151_s13] sm:$0xff] }
 0xbae   :  { %v2086_v30 = vperm.slane %v935_v24, 0 }
 0xbb0   :  { %v969_v45 = vmul.f32 %v2086_v30, %v962_v29  ;;  %v970_v36 = vmul.f32 %v2086_v30, %v965_v31  ;;  %v1155_v29 = vld [vmem:[%s2152_s14] sm:$0xff] }
 0xbb2   :  { %1303 = vmatmul.msk.f32.vlgmr.msrb.gmra.mxu0 %vm971_vm13, %v969_v45 }
 0xbba   :  { %1304 = vmatmul.msk.f32.gmra.mxu0 %vm971_vm13, %v970_v36 }
 0xbc6   :  { %s1352_s8 = spop %1351 }
 0xbc7   :  { %v1021_v55 = vstv %s1352_s8 }
 0xbc8   :  { %1383 = vrsqrt.f32 %v1021_v55  ;;  %vm1029_vm1 = vcmp.eq.f32.partialorder %v1021_v55, inf  ;;  %v1032_v23 = vand.u32 2147483648, %v1021_v55  ;;  %vm1031_vm3 = vcmp.eq.f32.partialorder %v1021_v55, 0.0 }
 0xbce   :  { %v1384_v60 = vpop.eup %1383 }
 0xbcf   :  { %v1023_v62 = vmul.f32 %v1384_v60, %v1021_v55 }
 0xbd1   :  { %v1024_v58 = vmul.f32 %v1384_v60, %v1023_v62 }
 0xbd3   :  { %v1025_v63 = vmul.f32 0.5, %v1024_v58 }
 0xbd5   :  { %v1026_v11 = vsub.f32 1.5, %v1025_v63 }
 0xbd7   :  { %v1027_v18 = vmul.f32 %v1384_v60, %v1026_v11 }
 0xbd9   :  { %v1028_v37 = vmul.f32 %v1027_v18, %v1021_v55 }
 0xbdb   :  { %v1030_v34 = vsel %vm1029_vm1, %v1021_v55, %v1028_v37 }
 0xbdc   :  { %v1033_v49 = vsel %vm1031_vm3, %v1032_v23, %v1030_v34 }
 0xbdd   :  { %1353 = vpush %v1033_v49 }
 0xc0e   :  { %s1354_s29 = spop %1353 }
 0xc0f   :  { %s1035_s30 = smax.f32 %s1424_s0, %s1354_s29 }
 0xc10   :  { %v1063_v33 = vstv %s1035_s30 }
 0xc11   :  { %1385 = vrcp.f32 %v1063_v33  ;;  %vm1069_vm7 = vweird.f32 %v1063_v33  ;;  %v1075_v19 = vand.u32 2147483648, %v1063_v33  ;;  %v1073_v52 = vand.u32 2147483647, %v1063_v33 }
 0xc13   :  { %v1076_v57 = vor.u32 1.1754944e-38, %v1075_v19  ;;  %vm1074_vm8 = vcmp.eq.f32.partialorder %v1073_v52, 8.507059e+37 }
 0xc17   :  { %v1386_v50 = vpop.eup %1385 }
 0xc18   :  { %v1065_v32 = vmul.f32 %v1386_v50, %v1063_v33  ;;  %vm1070_vm10 = vweird.f32 %v1386_v50 }
 0xc19   :  { %vm1071_vm0 = vmor %vm1069_vm7, %vm1070_vm10 }
 0xc1a   :  { %v1066_v20 = vsub.f32 1.0, %v1065_v32 }
 0xc1c   :  { %v1067_v51 = vmul.f32 %v1386_v50, %v1066_v20 }
 0xc1e   :  { %v1068_v16 = vadd.f32 %v1386_v50, %v1067_v51 }
 0xc20   :  { %v1072_v59 = vsel %vm1071_vm0, %v1386_v50, %v1068_v16 }
 0xc21   :  { %v1077_v13 = vsel %vm1074_vm8, %v1076_v57, %v1072_v59 }
 0xc2f   :  { %v998_v56 = vpop.f32.mrf.mxu0 }
 0xc30   :  { %v1004_v26 = vmul.f32 %v998_v56, %v2086_v30 }
 0xc32   :  { %v1006_v47 = vadd.f32 %v1004_v26, %v897_v44 }
 0xc37   :  { %v1001_v22 = vpop.f32.mrf.mxu0 }
 0xc38   :  { %v1005_v35 = vmul.f32 %v1001_v22, %v2086_v30 }
 0xc3a   :  { %v1007_v54 = vadd.f32 %v1005_v35, %v898_v0 }
 0xc3c   :  { %1305 = vmatpush.msk.msra.mxu3 %vm2166_vm4, %v1007_v54 }
 0xc3e   :  { %1058 = vmatpush.msra.mxu3 %v1006_v47 }
 0xc3f   :  { %1306 = vmatmul.msk.f32.vlgmr.msra.gmra.mxu3 %vm1036_vm5, %v2079_v1 }
 0xcc2   :  { %v1060_v46 = vpop.f32.mrf.mxu3 }
 0xcc3   :  { %v1078_v61 = vmul.f32 %v1077_v13, %v1060_v46 }
 0xcc5   :  { %1387 = vtanh.f32 %v1078_v61 }
 0xccb   :  { %v1388_v3 = vpop.eup %1387 }
 0xccc   :  { %v1080_v4 = vperm.slane %v1388_v3, 0 }
 0xcce   :  { %v1082_v5 = vmul.f32 %v1080_v4, %v1007_v54  ;;  %v1081_v6 = vmul.f32 %v1080_v4, %v1006_v47 }
 0xcd0   :  { %1307 = vmatpush.msk.msrb.mxu3 %vm2167_vm11, %v1082_v5 }
 0xcd2   :  { %1111 = vmatpush.msrb.mxu3 %v1081_v6 }
 0xcd3   :  { %1308 = vmatmul.msk.f32.vlgmr.msrb.gmra.mxu3 %vm1036_vm5, %v1083_v7 }
 0xcdb   :  { %1309 = vmatmul.msk.f32.gmra.mxu3 %vm1036_vm5, %v1084_v8 }
 0xd56   :  { %v1113_v12 = vpop.f32.mrf.mxu3 }
 0xd57   :  { %v1119_v43 = vmul.f32 %v1113_v12, %v2086_v30 }
 0xd59   :  { %1311 = vmatmul.msk.f32.vlgmr.msra.gmra.mxu2 %vm971_vm13, %v1119_v43 }
 0xd5e   :  { %v1116_v1 = vpop.f32.mrf.mxu3 }
 0xd5f   :  { %v1120_v2 = vmul.f32 %v1116_v1, %v2086_v30 }
 0xd61   :  { %1312 = vmatmul.msk.f32.gmra.mxu2 %vm971_vm13, %v1120_v2 }
 0xddc   :  { %v1144_v10 = vpop.f32.mrf.mxu2 }
 0xddd   :  { %v1150_v15 = vmul.f32 %v1144_v10, %v2086_v30 }
 0xddf   :  { %v1152_v28 = vadd.f32 %v1150_v15, %v1085_v21 }
 0xde4   :  { %v1147_v9 = vpop.f32.mrf.mxu2 }
 0xde5   :  { %v1151_v17 = vmul.f32 %v1147_v9, %v2086_v30 }
 0xde7   :  { %v1153_v27 = vadd.f32 %v1151_v17, %v1086_v14 }
 0xde9   :  { %1313 = vmatpush.msk.msra.mxu0 %vm675_vm2, %v1153_v27 }
 0xdeb   :  { %1178 = vmatpush.msra.mxu0 %v1152_v28 }
 0xdec   :  { %1314 = vmatmul.msk.f32.vlgmr.msra.gmra.mxu0 %vm1156_vm9, %v1154_v25 }
 0xe69   :  { %v1180_v24 = vpop.f32.mrf.mxu0 }
 0xe6a   :  { %v1181_v30 = vadd.f32 %v1180_v24, %v1155_v29 }
 0xe6c   :  { %v1183_v45 = vmax.f32 %v1181_v30, 0.0 }
 0xe6e   :  { %v1184_v31 = vsel %vm971_vm13, %v1183_v45, -inf }
 0xe6f   :  { %v1185_v36 = vrot.slane %v1184_v31, 4 }
 0xe71   :  { %v1186_v38 = vmax.f32 %v1184_v31, %v1185_v36 }
 0xe73   :  { %v1187_v39 = vrot.slane %v1186_v38, 2 }
 0xe75   :  { %v1188_v41 = vmax.f32 %v1186_v38, %v1187_v39 }
 0xe77   :  { %v1189_v40 = vrot.slane %v1188_v41, 1 }
 0xe79   :  { %v1190_v42 = vmax.f32 %v1188_v41, %v1189_v40 }
 0xe7b   :  { %v1191_v48 = vsub.f32 %v1183_v45, %v1190_v42 }
 0xe7d   :  { %v1192_v53 = vmul.f32 1.442695, %v1191_v48 }
 0xe7f   :  { %1389 = vpow2.f32 %v1192_v53 }
 0xe85   :  { %v1390_v55 = vpop.eup %1389 }
 0xe86   :  { %v1194_v60 = vsel %vm971_vm13, %v1390_v55, 0.0 }
 0xe87   :  { %v1195_v62 = vrot.slane %v1194_v60, 4 }
 0xe89   :  { %v1196_v56 = vadd.f32 %v1195_v62, %v1194_v60 }
 0xe8b   :  { %v1197_v58 = vrot.slane %v1196_v56, 2 }
 0xe8d   :  { %v1198_v63 = vadd.f32 %v1197_v58, %v1196_v56 }
 0xe8f   :  { %v1199_v11 = vrot.slane %v1198_v63, 1 }
 0xe91   :  { %v1200_v18 = vadd.f32 %v1199_v11, %v1198_v63 }
 0xe93   :  { %1391 = vlog2.f32 %v1200_v18 }
 0xe99   :  { %v1392_v0 = vpop.eup %1391 }
 0xe9a   :  { %v1202_v22 = vmul.f32 0.6931472, %v1392_v0 }
 0xe9c   :  { %v1203_v23 = vsub.f32 %v1191_v48, %v1202_v22 }
 0xe9e   :  { %1204 = vst.msk [vmem:[%s2153_s15] sm:$0xff] %vm971_vm13, %v1203_v23 }
 0xe9f   :  { %1209 = vsyncpa [#allocation3], 1 }

</bundles_post_ra>
